<compile_context>
chip_gen: v7x
topology: tpu7x:2x2x1
jax: 0.10.0
libtpu: 0.0.40
codegen_flags: <defaults>
</compile_context>

<pallas_src>
import functools

import jax
import jax.numpy as jnp
import numpy as np
from jax.experimental import pallas as pl
from jax.experimental.pallas import tpu as pltpu

# ---------------- problem sizes (small, consistent with the module) ----------------
B = 2          # batch
CIN = 3        # image channels
H = W = 16     # spatial
FEAT = 32      # stand-in for resnet.fc.in_features (2048 in the real model)
EMBED = 16     # embed_size
HIDDEN = 32    # hidden_size
VOCAB = 40     # vocab_size
TCAP = 8       # caption length -> LSTM sequence length = 1 + (TCAP - 1) = TCAP
LANE = 128     # lane-dense width (4*HIDDEN == LANE; VOCAB padded to LANE)
BP = 8         # batch padded to one sublane group


def _vmem():
    return pl.BlockSpec(memory_space=pltpu.MemorySpace.VMEM)


def _pad_block(x, rows, cols=LANE):
    r, c = x.shape
    return jnp.pad(x, ((0, rows - r), (0, cols - c)))


# ---------------- single fused Pallas kernel ----------------

def fused_kernel(patches_ref, pool_ref, slab_ref, out_ref, h_scr,
                 *, off, bp, t_len, hidden):
    def sect(name):
        o, n = off[name]
        return slab_ref[pl.ds(o, n), :]

    # --- EncoderCNN stand-in: conv3x3 (im2col matmul) + ReLU ---
    y = jnp.maximum(
        jnp.dot(patches_ref[...], sect("w_conv"),
                preferred_element_type=jnp.float32) + sect("b_conv"), 0.0)     # [B*HW, 128]

    # --- global average pool as a matmul (MXU instead of XLU sublane reduces) ---
    feat = jnp.dot(pool_ref[...], y, preferred_element_type=jnp.float32)        # [BP, 128]

    # --- encoder Linear + BatchNorm1d(eval) pre-folded on host (dropout = identity) ---
    features = (jnp.dot(feat, sect("w_enc"), preferred_element_type=jnp.float32)
                + sect("b_enc"))                                                # [BP, 128]

    # --- embedding lookup (one-hot matmul against the padded table) ---
    embeds = jnp.dot(sect("onehot"), sect("table"),
                     preferred_element_type=jnp.float32)                        # [(T-1)*BP, 128]
    xseq = jnp.concatenate([features, embeds], axis=0)                          # [T*BP, 128]

    # --- input projection into fused gate space, hoisted out of the recurrence ---
    xw_all = (jnp.dot(xseq, sect("wx"), preferred_element_type=jnp.float32)
              + sect("b_cat"))                                                  # [T*BP, 4H]

    # --- LSTM recurrence: one [BP,H]x[H,4H] matmul + gate math per step ---
    wh = sect("wh")                                                             # [H, 4H]
    h = jnp.zeros((bp, hidden), jnp.float32)
    c = jnp.zeros((bp, hidden), jnp.float32)
    for t in range(t_len):  # static, short trip count (T = 8)
        z = xw_all[t * bp:(t + 1) * bp, :] + jnp.dot(
            h, wh, preferred_element_type=jnp.float32)                          # [BP, 4H]
        s = jax.nn.sigmoid(z)      # one full-width EUP pass covers i, f, o
        tz = jnp.tanh(z)           # one full-width EUP pass covers g
        i_g = s[:, 0 * hidden:1 * hidden]
        f_g = s[:, 1 * hidden:2 * hidden]
        g_g = tz[:, 2 * hidden:3 * hidden]
        o_g = s[:, 3 * hidden:4 * hidden]
        c = f_g * c + i_g * g_g
        h = o_g * jnp.tanh(c)
        h_scr[pl.ds(t * bp, bp), :] = h        # sublane-aligned scratch write (no concat)

    # --- final Linear, lane-dense (VOCAB padded to 128): single unmasked HBM store ---
    out_ref[...] = (jnp.dot(h_scr[...], sect("w_fcn"),
                            preferred_element_type=jnp.float32) + sect("b_fcn"))


# ---------------- full forward (param packing + im2col glue in plain JAX) ----------------

def encoder_decoder_forward(params, images_nchw, captions):
    b, cin, h, w = images_nchw.shape
    t_len = captions.shape[1]
    hw = h * w
    assert b <= BP

    # im2col for the 3x3 SAME conv (stand-in ResNet stage); K = 9*cin padded 27 -> 32
    x = jnp.transpose(images_nchw, (0, 2, 3, 1))                    # NCHW -> NHWC
    xp = jnp.pad(x, ((0, 0), (1, 1), (1, 1), (0, 0)))
    cols = [xp[:, dh:dh + h, dw:dw + w, :] for dh in range(3) for dw in range(3)]
    kdim = 9 * cin
    kpad = -(-kdim // 8) * 8
    patches = jnp.concatenate(cols, axis=-1).reshape(b * hw, kdim)
    patches = jnp.pad(patches, ((0, 0), (0, kpad - kdim)))           # [B*HW, 32]

    # global-average-pool matrix; rows for padded batches (b..BP-1) are all-zero
    pool_mat = ((jnp.arange(BP)[:, None] == (jnp.arange(b * hw) // hw)[None, :])
                .astype(jnp.float32) / float(hw))                    # [BP, B*HW]

    # fold BatchNorm1d (eval) into the encoder Linear
    inv = jax.lax.rsqrt(params["bn_var"] + 1e-5) * params["bn_gamma"]
    w_enc = params["w_embed"] * inv[None, :]
    b_enc = (params["b_embed"] - params["bn_mean"]) * inv + params["bn_beta"]

    # fused LSTM gate weights / bias (gate order i, f, g, o)
    wx_cat = jnp.concatenate([params["wxi"], params["wxf"],
                              params["wxg"], params["wxo"]], axis=1)     # [EMBED, 4H]
    wh_cat = jnp.concatenate([params["whi"], params["whf"],
                              params["whg"], params["who"]], axis=1)     # [HIDDEN, 4H]
    b_cat = jnp.concatenate([params["bi"], params["bf"],
                             params["bg"], params["bo"]], axis=0)        # [4H]

    # one-hot caption ids, time-major, batch padded to BP (pad rows are all-zero)
    ids_tm = jnp.transpose(captions[:, :-1]).astype(jnp.int32)           # [T-1, B]
    ids_pad = jnp.pad(ids_tm, ((0, 0), (0, BP - b)), constant_values=-1).reshape(-1)
    onehot = (ids_pad[:, None] == jnp.arange(VOCAB)[None, :]).astype(jnp.float32)

    # pack all weights/biases/one-hots into ONE lane-dense [R, 128] slab (3 input DMAs total)
    w_conv_mat = params["w_conv"].reshape(kdim, -1)                      # (kh*kw*Cin, Cout)
    sections = [  # (name, padded block [rows multiple of 8, 128 lanes], rows read in-kernel)
        ("w_conv", _pad_block(w_conv_mat, kpad), kpad),
        ("b_conv", _pad_block(params["b_conv"][None, :], 8), 1),
        ("w_enc", _pad_block(w_enc, LANE), LANE),
        ("b_enc", _pad_block(b_enc[None, :], 8), 1),
        ("table", _pad_block(params["emb_table"], LANE), LANE),
        ("wx", _pad_block(wx_cat, LANE), LANE),
        ("b_cat", _pad_block(b_cat[None, :], 8), 1),
        ("wh", _pad_block(wh_cat, HIDDEN), HIDDEN),
        ("w_fcn", _pad_block(params["w_fcn"], HIDDEN), HIDDEN),
        ("b_fcn", _pad_block(params["b_fcn"][None, :], 8), 1),
        ("onehot", _pad_block(onehot, (t_len - 1) * BP), (t_len - 1) * BP),
    ]
    off, blocks, row = {}, [], 0
    for name, blk, used in sections:
        off[name] = (row, used)
        blocks.append(blk)
        row += blk.shape[0]
    slab = jnp.concatenate(blocks, axis=0)                               # [R, 128] f32

    out = pl.pallas_call(
        functools.partial(fused_kernel, off=off, bp=BP, t_len=t_len, hidden=HIDDEN),
        out_shape=jax.ShapeDtypeStruct((t_len * BP, LANE), jnp.float32),
        in_specs=[_vmem(), _vmem(), _vmem()],
        out_specs=_vmem(),
        scratch_shapes=[pltpu.VMEM((t_len * BP, HIDDEN), jnp.float32)],
    )(patches, pool_mat, slab)

    # [T*BP, 128] time-major (padded batch) -> [B, T, VOCAB]
    return jnp.transpose(out.reshape(t_len, BP, LANE)[:, :b, :VOCAB], (1, 0, 2))


# ---------------- pure-JAX reference for verification ----------------

def reference_forward(params, images_nchw, captions):
    x = jnp.transpose(images_nchw, (0, 2, 3, 1))
    y = jax.lax.conv_general_dilated(
        x, params["w_conv"], window_strides=(1, 1), padding="SAME",
        dimension_numbers=("NHWC", "HWIO", "NHWC"))
    y = jnp.maximum(y + params["b_conv"], 0.0)
    feat = jnp.mean(y, axis=(1, 2))
    emb = feat @ params["w_embed"] + params["b_embed"]
    emb = ((emb - params["bn_mean"]) * jax.lax.rsqrt(params["bn_var"] + 1e-5)
           * params["bn_gamma"] + params["bn_beta"])
    embeds = params["emb_table"][captions[:, :-1]]
    xseq = jnp.concatenate([emb[:, None, :], embeds], axis=1)
    b, t_len, _ = xseq.shape
    hh = params["whi"].shape[1]
    h = jnp.zeros((b, hh), jnp.float32)
    c = jnp.zeros((b, hh), jnp.float32)
    hs = []
    for t in range(t_len):
        xt = xseq[:, t, :]
        i = jax.nn.sigmoid(xt @ params["wxi"] + h @ params["whi"] + params["bi"])
        f = jax.nn.sigmoid(xt @ params["wxf"] + h @ params["whf"] + params["bf"])
        g = jnp.tanh(xt @ params["wxg"] + h @ params["whg"] + params["bg"])
        o = jax.nn.sigmoid(xt @ params["wxo"] + h @ params["who"] + params["bo"])
        c = f * c + i * g
        h = o * jnp.tanh(c)
        hs.append(h)
    hseq = jnp.stack(hs, axis=1)
    return hseq @ params["w_fcn"] + params["b_fcn"]


# ---------------- deterministic parameter init ----------------

def init_params(key):
    ks = jax.random.split(key, 16)
    p = {}
    p["w_conv"] = jax.random.normal(ks[0], (3, 3, CIN, FEAT), jnp.float32) * 0.1
    p["b_conv"] = jax.random.normal(ks[1], (FEAT,), jnp.float32) * 0.01
    p["w_embed"] = jax.random.normal(ks[2], (FEAT, EMBED), jnp.float32) * 0.1
    p["b_embed"] = jax.random.normal(ks[3], (EMBED,), jnp.float32) * 0.01
    p["bn_gamma"] = jnp.ones((EMBED,), jnp.float32)
    p["bn_beta"] = jnp.zeros((EMBED,), jnp.float32)
    p["bn_mean"] = jnp.zeros((EMBED,), jnp.float32)
    p["bn_var"] = jnp.ones((EMBED,), jnp.float32)
    p["emb_table"] = jax.random.normal(ks[4], (VOCAB, EMBED), jnp.float32) * 0.1
    gate_keys = jax.random.split(ks[5], 12)
    names = ["i", "f", "g", "o"]
    for idx, nm in enumerate(names):
        p["wx" + nm] = jax.random.normal(gate_keys[3 * idx], (EMBED, HIDDEN), jnp.float32) * 0.1
        p["wh" + nm] = jax.random.normal(gate_keys[3 * idx + 1], (HIDDEN, HIDDEN), jnp.float32) * 0.1
        p["b" + nm] = jax.random.normal(gate_keys[3 * idx + 2], (HIDDEN,), jnp.float32) * 0.01
    p["w_fcn"] = jax.random.normal(ks[6], (HIDDEN, VOCAB), jnp.float32) * 0.1
    p["b_fcn"] = jax.random.normal(ks[7], (VOCAB,), jnp.float32) * 0.01
    return p


if __name__ == "__main__":
    root = jax.random.PRNGKey(0)
    k_param, k_img, k_cap = jax.random.split(root, 3)

    params = init_params(k_param)
    images = jax.random.normal(k_img, (B, CIN, H, W), jnp.float32)          # NCHW
    captions = jax.random.randint(k_cap, (B, TCAP), 0, VOCAB).astype(jnp.int32)

    fwd = jax.jit(encoder_decoder_forward)
    out = jax.block_until_ready(fwd(params, images, captions))

    ref = jax.block_until_ready(reference_forward(params, images, captions))

    assert out.shape == (B, TCAP, VOCAB), out.shape
    # default (bf16 MXU, f32-accumulate) matmul precision + BN/embedding folds change rounding
    # order vs the reference, so tolerance is 2e-2 (measured diffs are ~1e-3).
    np.testing.assert_allclose(np.asarray(out), np.asarray(ref), rtol=2e-2, atol=2e-2)
    print("KERNEL_OK")
</pallas_src>

<mosaic_0001>
module attributes {stable_mosaic.version = 11 : i64} {
  func.func @fused_kernel(%arg0: memref<512x32xf32, #tpu.memory_space<vmem>>, %arg1: memref<8x512xf32, #tpu.memory_space<vmem>>, %arg2: memref<568x128xf32, #tpu.memory_space<vmem>>, %arg3: memref<64x128xf32, #tpu.memory_space<vmem>>, %arg4: memref<64x32xf32, #tpu.memory_space<vmem>>) attributes {dimension_semantics = [], scalar_prefetch = 0 : i64, scratch_operands = 1 : i64, tpu.core_type = #tpu.core_type<tc>} {
    %c0 = arith.constant 0 : index
    %c0_0 = arith.constant 0 : index
    %0 = vector.load %arg0[%c0, %c0_0] : memref<512x32xf32, #tpu.memory_space<vmem>>, vector<512x32xf32>
    %c0_1 = arith.constant 0 : index
    %c0_2 = arith.constant 0 : index
    %1 = vector.load %arg2[%c0_1, %c0_2] : memref<568x128xf32, #tpu.memory_space<vmem>>, vector<32x128xf32>
    %cst = arith.constant dense<0.000000e+00> : vector<512x128xf32>
    %2 = tpu.matmul %0, %1, %cst {dimension_numbers = #tpu.dot_dimension_numbers<[1], [0], [0], [1], [0, 0, 1, 1], [], []>} : vector<512x32xf32>, vector<32x128xf32>, vector<512x128xf32> -> vector<512x128xf32>
    %c32 = arith.constant 32 : index
    %c0_3 = arith.constant 0 : index
    %3 = vector.load %arg2[%c32, %c0_3] : memref<568x128xf32, #tpu.memory_space<vmem>>, vector<1x128xf32>
    %4 = vector.broadcast %3 : vector<1x128xf32> to vector<512x128xf32>
    %5 = arith.addf %2, %4 : vector<512x128xf32>
    %cst_4 = arith.constant 0.000000e+00 : f32
    %6 = vector.broadcast %cst_4 : f32 to vector<512x128xf32>
    %7 = arith.maximumf %5, %6 : vector<512x128xf32>
    %c0_5 = arith.constant 0 : index
    %c0_6 = arith.constant 0 : index
    %8 = vector.load %arg1[%c0_5, %c0_6] : memref<8x512xf32, #tpu.memory_space<vmem>>, vector<8x512xf32>
    %cst_7 = arith.constant dense<0.000000e+00> : vector<8x128xf32>
    %9 = tpu.matmul %8, %7, %cst_7 {dimension_numbers = #tpu.dot_dimension_numbers<[1], [0], [0], [1], [0, 0, 1, 1], [], []>} : vector<8x512xf32>, vector<512x128xf32>, vector<8x128xf32> -> vector<8x128xf32>
    %c40 = arith.constant 40 : index
    %c0_8 = arith.constant 0 : index
    %10 = vector.load %arg2[%c40, %c0_8] : memref<568x128xf32, #tpu.memory_space<vmem>>, vector<128x128xf32>
    %cst_9 = arith.constant dense<0.000000e+00> : vector<8x128xf32>
    %11 = tpu.matmul %9, %10, %cst_9 {dimension_numbers = #tpu.dot_dimension_numbers<[1], [0], [0], [1], [0, 0, 1, 1], [], []>} : vector<8x128xf32>, vector<128x128xf32>, vector<8x128xf32> -> vector<8x128xf32>
    %c168 = arith.constant 168 : index
    %c0_10 = arith.constant 0 : index
    %12 = vector.load %arg2[%c168, %c0_10] : memref<568x128xf32, #tpu.memory_space<vmem>>, vector<1x128xf32>
    %13 = vector.broadcast %12 : vector<1x128xf32> to vector<8x128xf32>
    %14 = arith.addf %11, %13 : vector<8x128xf32>
    %c512 = arith.constant 512 : index
    %c0_11 = arith.constant 0 : index
    %15 = vector.load %arg2[%c512, %c0_11] : memref<568x128xf32, #tpu.memory_space<vmem>>, vector<56x128xf32>
    %c176 = arith.constant 176 : index
    %c0_12 = arith.constant 0 : index
    %16 = vector.load %arg2[%c176, %c0_12] : memref<568x128xf32, #tpu.memory_space<vmem>>, vector<128x128xf32>
    %cst_13 = arith.constant dense<0.000000e+00> : vector<56x128xf32>
    %17 = tpu.matmul %15, %16, %cst_13 {dimension_numbers = #tpu.dot_dimension_numbers<[1], [0], [0], [1], [0, 0, 1, 1], [], []>} : vector<56x128xf32>, vector<128x128xf32>, vector<56x128xf32> -> vector<56x128xf32>
    %18 = tpu.concatenate %14, %17 in 0 : vector<8x128xf32>, vector<56x128xf32> -> vector<64x128xf32>
    %c304 = arith.constant 304 : index
    %c0_14 = arith.constant 0 : index
    %19 = vector.load %arg2[%c304, %c0_14] : memref<568x128xf32, #tpu.memory_space<vmem>>, vector<128x128xf32>
    %cst_15 = arith.constant dense<0.000000e+00> : vector<64x128xf32>
    %20 = tpu.matmul %18, %19, %cst_15 {dimension_numbers = #tpu.dot_dimension_numbers<[1], [0], [0], [1], [0, 0, 1, 1], [], []>} : vector<64x128xf32>, vector<128x128xf32>, vector<64x128xf32> -> vector<64x128xf32>
    %c432 = arith.constant 432 : index
    %c0_16 = arith.constant 0 : index
    %21 = vector.load %arg2[%c432, %c0_16] : memref<568x128xf32, #tpu.memory_space<vmem>>, vector<1x128xf32>
    %22 = vector.broadcast %21 : vector<1x128xf32> to vector<64x128xf32>
    %23 = arith.addf %20, %22 : vector<64x128xf32>
    %c440 = arith.constant 440 : index
    %c0_17 = arith.constant 0 : index
    %24 = vector.load %arg2[%c440, %c0_17] : memref<568x128xf32, #tpu.memory_space<vmem>>, vector<32x128xf32>
    %cst_18 = arith.constant 0.000000e+00 : f32
    %25 = vector.broadcast %cst_18 : f32 to vector<8x32xf32>
    %cst_19 = arith.constant 0.000000e+00 : f32
    %26 = vector.broadcast %cst_19 : f32 to vector<8x32xf32>
    %27 = vector.extract_strided_slice %23 {offsets = [0, 0], sizes = [8, 128], strides = [1, 1]} : vector<64x128xf32> to vector<8x128xf32>
    %cst_20 = arith.constant dense<0.000000e+00> : vector<8x128xf32>
    %28 = tpu.matmul %25, %24, %cst_20 {dimension_numbers = #tpu.dot_dimension_numbers<[1], [0], [0], [1], [0, 0, 1, 1], [], []>} : vector<8x32xf32>, vector<32x128xf32>, vector<8x128xf32> -> vector<8x128xf32>
    %29 = arith.addf %27, %28 : vector<8x128xf32>
    %30 = arith.negf %29 : vector<8x128xf32>
    %31 = math.exp %30 : vector<8x128xf32>
    %cst_21 = arith.constant 1.000000e+00 : f32
    %32 = vector.broadcast %cst_21 : f32 to vector<8x128xf32>
    %33 = arith.addf %32, %31 : vector<8x128xf32>
    %34 = arith.divf %32, %33 : vector<8x128xf32>
    %35 = math.tanh %29 : vector<8x128xf32>
    %36 = vector.extract_strided_slice %34 {offsets = [0, 0], sizes = [8, 32], strides = [1, 1]} : vector<8x128xf32> to vector<8x32xf32>
    %37 = vector.extract_strided_slice %34 {offsets = [0, 32], sizes = [8, 32], strides = [1, 1]} : vector<8x128xf32> to vector<8x32xf32>
    %38 = vector.extract_strided_slice %35 {offsets = [0, 64], sizes = [8, 32], strides = [1, 1]} : vector<8x128xf32> to vector<8x32xf32>
    %39 = vector.extract_strided_slice %34 {offsets = [0, 96], sizes = [8, 32], strides = [1, 1]} : vector<8x128xf32> to vector<8x32xf32>
    %40 = arith.mulf %37, %26 : vector<8x32xf32>
    %41 = arith.mulf %36, %38 : vector<8x32xf32>
    %42 = arith.addf %40, %41 : vector<8x32xf32>
    %43 = math.tanh %42 : vector<8x32xf32>
    %44 = arith.mulf %39, %43 : vector<8x32xf32>
    %c0_22 = arith.constant 0 : index
    %c0_23 = arith.constant 0 : index
    %45 = vector.load %arg4[%c0_22, %c0_23] : memref<64x32xf32, #tpu.memory_space<vmem>>, vector<8x32xf32>
    tpu.vector_store %arg4[%c0_22, %c0_23], %44 {strides = array<i32>} : memref<64x32xf32, #tpu.memory_space<vmem>>, vector<8x32xf32>,
    %46 = vector.extract_strided_slice %23 {offsets = [8, 0], sizes = [8, 128], strides = [1, 1]} : vector<64x128xf32> to vector<8x128xf32>
    %cst_24 = arith.constant dense<0.000000e+00> : vector<8x128xf32>
    %47 = tpu.matmul %44, %24, %cst_24 {dimension_numbers = #tpu.dot_dimension_numbers<[1], [0], [0], [1], [0, 0, 1, 1], [], []>} : vector<8x32xf32>, vector<32x128xf32>, vector<8x128xf32> -> vector<8x128xf32>
    %48 = arith.addf %46, %47 : vector<8x128xf32>
    %49 = arith.negf %48 : vector<8x128xf32>
    %50 = math.exp %49 : vector<8x128xf32>
    %cst_25 = arith.constant 1.000000e+00 : f32
    %51 = vector.broadcast %cst_25 : f32 to vector<8x128xf32>
    %52 = arith.addf %51, %50 : vector<8x128xf32>
    %53 = arith.divf %51, %52 : vector<8x128xf32>
    %54 = math.tanh %48 : vector<8x128xf32>
    %55 = vector.extract_strided_slice %53 {offsets = [0, 0], sizes = [8, 32], strides = [1, 1]} : vector<8x128xf32> to vector<8x32xf32>
    %56 = vector.extract_strided_slice %53 {offsets = [0, 32], sizes = [8, 32], strides = [1, 1]} : vector<8x128xf32> to vector<8x32xf32>
    %57 = vector.extract_strided_slice %54 {offsets = [0, 64], sizes = [8, 32], strides = [1, 1]} : vector<8x128xf32> to vector<8x32xf32>
    %58 = vector.extract_strided_slice %53 {offsets = [0, 96], sizes = [8, 32], strides = [1, 1]} : vector<8x128xf32> to vector<8x32xf32>
    %59 = arith.mulf %56, %42 : vector<8x32xf32>
    %60 = arith.mulf %55, %57 : vector<8x32xf32>
    %61 = arith.addf %59, %60 : vector<8x32xf32>
    %62 = math.tanh %61 : vector<8x32xf32>
    %63 = arith.mulf %58, %62 : vector<8x32xf32>
    %c8 = arith.constant 8 : index
    %c0_26 = arith.constant 0 : index
    %64 = vector.load %arg4[%c8, %c0_26] : memref<64x32xf32, #tpu.memory_space<vmem>>, vector<8x32xf32>
    tpu.vector_store %arg4[%c8, %c0_26], %63 {strides = array<i32>} : memref<64x32xf32, #tpu.memory_space<vmem>>, vector<8x32xf32>,
    %65 = vector.extract_strided_slice %23 {offsets = [16, 0], sizes = [8, 128], strides = [1, 1]} : vector<64x128xf32> to vector<8x128xf32>
    %cst_27 = arith.constant dense<0.000000e+00> : vector<8x128xf32>
    %66 = tpu.matmul %63, %24, %cst_27 {dimension_numbers = #tpu.dot_dimension_numbers<[1], [0], [0], [1], [0, 0, 1, 1], [], []>} : vector<8x32xf32>, vector<32x128xf32>, vector<8x128xf32> -> vector<8x128xf32>
    %67 = arith.addf %65, %66 : vector<8x128xf32>
    %68 = arith.negf %67 : vector<8x128xf32>
    %69 = math.exp %68 : vector<8x128xf32>
    %cst_28 = arith.constant 1.000000e+00 : f32
    %70 = vector.broadcast %cst_28 : f32 to vector<8x128xf32>
    %71 = arith.addf %70, %69 : vector<8x128xf32>
    %72 = arith.divf %70, %71 : vector<8x128xf32>
    %73 = math.tanh %67 : vector<8x128xf32>
    %74 = vector.extract_strided_slice %72 {offsets = [0, 0], sizes = [8, 32], strides = [1, 1]} : vector<8x128xf32> to vector<8x32xf32>
    %75 = vector.extract_strided_slice %72 {offsets = [0, 32], sizes = [8, 32], strides = [1, 1]} : vector<8x128xf32> to vector<8x32xf32>
    %76 = vector.extract_strided_slice %73 {offsets = [0, 64], sizes = [8, 32], strides = [1, 1]} : vector<8x128xf32> to vector<8x32xf32>
    %77 = vector.extract_strided_slice %72 {offsets = [0, 96], sizes = [8, 32], strides = [1, 1]} : vector<8x128xf32> to vector<8x32xf32>
    %78 = arith.mulf %75, %61 : vector<8x32xf32>
    %79 = arith.mulf %74, %76 : vector<8x32xf32>
    %80 = arith.addf %78, %79 : vector<8x32xf32>
    %81 = math.tanh %80 : vector<8x32xf32>
    %82 = arith.mulf %77, %81 : vector<8x32xf32>
    %c16 = arith.constant 16 : index
    %c0_29 = arith.constant 0 : index
    %83 = vector.load %arg4[%c16, %c0_29] : memref<64x32xf32, #tpu.memory_space<vmem>>, vector<8x32xf32>
    tpu.vector_store %arg4[%c16, %c0_29], %82 {strides = array<i32>} : memref<64x32xf32, #tpu.memory_space<vmem>>, vector<8x32xf32>,
    %84 = vector.extract_strided_slice %23 {offsets = [24, 0], sizes = [8, 128], strides = [1, 1]} : vector<64x128xf32> to vector<8x128xf32>
    %cst_30 = arith.constant dense<0.000000e+00> : vector<8x128xf32>
    %85 = tpu.matmul %82, %24, %cst_30 {dimension_numbers = #tpu.dot_dimension_numbers<[1], [0], [0], [1], [0, 0, 1, 1], [], []>} : vector<8x32xf32>, vector<32x128xf32>, vector<8x128xf32> -> vector<8x128xf32>
    %86 = arith.addf %84, %85 : vector<8x128xf32>
    %87 = arith.negf %86 : vector<8x128xf32>
    %88 = math.exp %87 : vector<8x128xf32>
    %cst_31 = arith.constant 1.000000e+00 : f32
    %89 = vector.broadcast %cst_31 : f32 to vector<8x128xf32>
    %90 = arith.addf %89, %88 : vector<8x128xf32>
    %91 = arith.divf %89, %90 : vector<8x128xf32>
    %92 = math.tanh %86 : vector<8x128xf32>
    %93 = vector.extract_strided_slice %91 {offsets = [0, 0], sizes = [8, 32], strides = [1, 1]} : vector<8x128xf32> to vector<8x32xf32>
    %94 = vector.extract_strided_slice %91 {offsets = [0, 32], sizes = [8, 32], strides = [1, 1]} : vector<8x128xf32> to vector<8x32xf32>
    %95 = vector.extract_strided_slice %92 {offsets = [0, 64], sizes = [8, 32], strides = [1, 1]} : vector<8x128xf32> to vector<8x32xf32>
    %96 = vector.extract_strided_slice %91 {offsets = [0, 96], sizes = [8, 32], strides = [1, 1]} : vector<8x128xf32> to vector<8x32xf32>
    %97 = arith.mulf %94, %80 : vector<8x32xf32>
    %98 = arith.mulf %93, %95 : vector<8x32xf32>
    %99 = arith.addf %97, %98 : vector<8x32xf32>
    %100 = math.tanh %99 : vector<8x32xf32>
    %101 = arith.mulf %96, %100 : vector<8x32xf32>
    %c24 = arith.constant 24 : index
    %c0_32 = arith.constant 0 : index
    %102 = vector.load %arg4[%c24, %c0_32] : memref<64x32xf32, #tpu.memory_space<vmem>>, vector<8x32xf32>
    tpu.vector_store %arg4[%c24, %c0_32], %101 {strides = array<i32>} : memref<64x32xf32, #tpu.memory_space<vmem>>, vector<8x32xf32>,
    %103 = vector.extract_strided_slice %23 {offsets = [32, 0], sizes = [8, 128], strides = [1, 1]} : vector<64x128xf32> to vector<8x128xf32>
    %cst_33 = arith.constant dense<0.000000e+00> : vector<8x128xf32>
    %104 = tpu.matmul %101, %24, %cst_33 {dimension_numbers = #tpu.dot_dimension_numbers<[1], [0], [0], [1], [0, 0, 1, 1], [], []>} : vector<8x32xf32>, vector<32x128xf32>, vector<8x128xf32> -> vector<8x128xf32>
    %105 = arith.addf %103, %104 : vector<8x128xf32>
    %106 = arith.negf %105 : vector<8x128xf32>
    %107 = math.exp %106 : vector<8x128xf32>
    %cst_34 = arith.constant 1.000000e+00 : f32
    %108 = vector.broadcast %cst_34 : f32 to vector<8x128xf32>
    %109 = arith.addf %108, %107 : vector<8x128xf32>
    %110 = arith.divf %108, %109 : vector<8x128xf32>
    %111 = math.tanh %105 : vector<8x128xf32>
    %112 = vector.extract_strided_slice %110 {offsets = [0, 0], sizes = [8, 32], strides = [1, 1]} : vector<8x128xf32> to vector<8x32xf32>
    %113 = vector.extract_strided_slice %110 {offsets = [0, 32], sizes = [8, 32], strides = [1, 1]} : vector<8x128xf32> to vector<8x32xf32>
    %114 = vector.extract_strided_slice %111 {offsets = [0, 64], sizes = [8, 32], strides = [1, 1]} : vector<8x128xf32> to vector<8x32xf32>
    %115 = vector.extract_strided_slice %110 {offsets = [0, 96], sizes = [8, 32], strides = [1, 1]} : vector<8x128xf32> to vector<8x32xf32>
    %116 = arith.mulf %113, %99 : vector<8x32xf32>
    %117 = arith.mulf %112, %114 : vector<8x32xf32>
    %118 = arith.addf %116, %117 : vector<8x32xf32>
    %119 = math.tanh %118 : vector<8x32xf32>
    %120 = arith.mulf %115, %119 : vector<8x32xf32>
    %c32_35 = arith.constant 32 : index
    %c0_36 = arith.constant 0 : index
    %121 = vector.load %arg4[%c32_35, %c0_36] : memref<64x32xf32, #tpu.memory_space<vmem>>, vector<8x32xf32>
    tpu.vector_store %arg4[%c32_35, %c0_36], %120 {strides = array<i32>} : memref<64x32xf32, #tpu.memory_space<vmem>>, vector<8x32xf32>,
    %122 = vector.extract_strided_slice %23 {offsets = [40, 0], sizes = [8, 128], strides = [1, 1]} : vector<64x128xf32> to vector<8x128xf32>
    %cst_37 = arith.constant dense<0.000000e+00> : vector<8x128xf32>
    %123 = tpu.matmul %120, %24, %cst_37 {dimension_numbers = #tpu.dot_dimension_numbers<[1], [0], [0], [1], [0, 0, 1, 1], [], []>} : vector<8x32xf32>, vector<32x128xf32>, vector<8x128xf32> -> vector<8x128xf32>
    %124 = arith.addf %122, %123 : vector<8x128xf32>
    %125 = arith.negf %124 : vector<8x128xf32>
    %126 = math.exp %125 : vector<8x128xf32>
    %cst_38 = arith.constant 1.000000e+00 : f32
    %127 = vector.broadcast %cst_38 : f32 to vector<8x128xf32>
    %128 = arith.addf %127, %126 : vector<8x128xf32>
    %129 = arith.divf %127, %128 : vector<8x128xf32>
    %130 = math.tanh %124 : vector<8x128xf32>
    %131 = vector.extract_strided_slice %129 {offsets = [0, 0], sizes = [8, 32], strides = [1, 1]} : vector<8x128xf32> to vector<8x32xf32>
    %132 = vector.extract_strided_slice %129 {offsets = [0, 32], sizes = [8, 32], strides = [1, 1]} : vector<8x128xf32> to vector<8x32xf32>
    %133 = vector.extract_strided_slice %130 {offsets = [0, 64], sizes = [8, 32], strides = [1, 1]} : vector<8x128xf32> to vector<8x32xf32>
    %134 = vector.extract_strided_slice %129 {offsets = [0, 96], sizes = [8, 32], strides = [1, 1]} : vector<8x128xf32> to vector<8x32xf32>
    %135 = arith.mulf %132, %118 : vector<8x32xf32>
    %136 = arith.mulf %131, %133 : vector<8x32xf32>
    %137 = arith.addf %135, %136 : vector<8x32xf32>
    %138 = math.tanh %137 : vector<8x32xf32>
    %139 = arith.mulf %134, %138 : vector<8x32xf32>
    %c40_39 = arith.constant 40 : index
    %c0_40 = arith.constant 0 : index
    %140 = vector.load %arg4[%c40_39, %c0_40] : memref<64x32xf32, #tpu.memory_space<vmem>>, vector<8x32xf32>
    tpu.vector_store %arg4[%c40_39, %c0_40], %139 {strides = array<i32>} : memref<64x32xf32, #tpu.memory_space<vmem>>, vector<8x32xf32>,
    %141 = vector.extract_strided_slice %23 {offsets = [48, 0], sizes = [8, 128], strides = [1, 1]} : vector<64x128xf32> to vector<8x128xf32>
    %cst_41 = arith.constant dense<0.000000e+00> : vector<8x128xf32>
    %142 = tpu.matmul %139, %24, %cst_41 {dimension_numbers = #tpu.dot_dimension_numbers<[1], [0], [0], [1], [0, 0, 1, 1], [], []>} : vector<8x32xf32>, vector<32x128xf32>, vector<8x128xf32> -> vector<8x128xf32>
    %143 = arith.addf %141, %142 : vector<8x128xf32>
    %144 = arith.negf %143 : vector<8x128xf32>
    %145 = math.exp %144 : vector<8x128xf32>
    %cst_42 = arith.constant 1.000000e+00 : f32
    %146 = vector.broadcast %cst_42 : f32 to vector<8x128xf32>
    %147 = arith.addf %146, %145 : vector<8x128xf32>
    %148 = arith.divf %146, %147 : vector<8x128xf32>
    %149 = math.tanh %143 : vector<8x128xf32>
    %150 = vector.extract_strided_slice %148 {offsets = [0, 0], sizes = [8, 32], strides = [1, 1]} : vector<8x128xf32> to vector<8x32xf32>
    %151 = vector.extract_strided_slice %148 {offsets = [0, 32], sizes = [8, 32], strides = [1, 1]} : vector<8x128xf32> to vector<8x32xf32>
    %152 = vector.extract_strided_slice %149 {offsets = [0, 64], sizes = [8, 32], strides = [1, 1]} : vector<8x128xf32> to vector<8x32xf32>
    %153 = vector.extract_strided_slice %148 {offsets = [0, 96], sizes = [8, 32], strides = [1, 1]} : vector<8x128xf32> to vector<8x32xf32>
    %154 = arith.mulf %151, %137 : vector<8x32xf32>
    %155 = arith.mulf %150, %152 : vector<8x32xf32>
    %156 = arith.addf %154, %155 : vector<8x32xf32>
    %157 = math.tanh %156 : vector<8x32xf32>
    %158 = arith.mulf %153, %157 : vector<8x32xf32>
    %c48 = arith.constant 48 : index
    %c0_43 = arith.constant 0 : index
    %159 = vector.load %arg4[%c48, %c0_43] : memref<64x32xf32, #tpu.memory_space<vmem>>, vector<8x32xf32>
    tpu.vector_store %arg4[%c48, %c0_43], %158 {strides = array<i32>} : memref<64x32xf32, #tpu.memory_space<vmem>>, vector<8x32xf32>,
    %160 = vector.extract_strided_slice %23 {offsets = [56, 0], sizes = [8, 128], strides = [1, 1]} : vector<64x128xf32> to vector<8x128xf32>
    %cst_44 = arith.constant dense<0.000000e+00> : vector<8x128xf32>
    %161 = tpu.matmul %158, %24, %cst_44 {dimension_numbers = #tpu.dot_dimension_numbers<[1], [0], [0], [1], [0, 0, 1, 1], [], []>} : vector<8x32xf32>, vector<32x128xf32>, vector<8x128xf32> -> vector<8x128xf32>
    %162 = arith.addf %160, %161 : vector<8x128xf32>
    %163 = arith.negf %162 : vector<8x128xf32>
    %164 = math.exp %163 : vector<8x128xf32>
    %cst_45 = arith.constant 1.000000e+00 : f32
    %165 = vector.broadcast %cst_45 : f32 to vector<8x128xf32>
    %166 = arith.addf %165, %164 : vector<8x128xf32>
    %167 = arith.divf %165, %166 : vector<8x128xf32>
    %168 = math.tanh %162 : vector<8x128xf32>
    %169 = vector.extract_strided_slice %167 {offsets = [0, 0], sizes = [8, 32], strides = [1, 1]} : vector<8x128xf32> to vector<8x32xf32>
    %170 = vector.extract_strided_slice %167 {offsets = [0, 32], sizes = [8, 32], strides = [1, 1]} : vector<8x128xf32> to vector<8x32xf32>
    %171 = vector.extract_strided_slice %168 {offsets = [0, 64], sizes = [8, 32], strides = [1, 1]} : vector<8x128xf32> to vector<8x32xf32>
    %172 = vector.extract_strided_slice %167 {offsets = [0, 96], sizes = [8, 32], strides = [1, 1]} : vector<8x128xf32> to vector<8x32xf32>
    %173 = arith.mulf %170, %156 : vector<8x32xf32>
    %174 = arith.mulf %169, %171 : vector<8x32xf32>
    %175 = arith.addf %173, %174 : vector<8x32xf32>
    %176 = math.tanh %175 : vector<8x32xf32>
    %177 = arith.mulf %172, %176 : vector<8x32xf32>
    %c56 = arith.constant 56 : index
    %c0_46 = arith.constant 0 : index
    %178 = vector.load %arg4[%c56, %c0_46] : memref<64x32xf32, #tpu.memory_space<vmem>>, vector<8x32xf32>
    tpu.vector_store %arg4[%c56, %c0_46], %177 {strides = array<i32>} : memref<64x32xf32, #tpu.memory_space<vmem>>, vector<8x32xf32>,
    %c0_47 = arith.constant 0 : index
    %c0_48 = arith.constant 0 : index
    %179 = vector.load %arg4[%c0_47, %c0_48] : memref<64x32xf32, #tpu.memory_space<vmem>>, vector<64x32xf32>
    %c472 = arith.constant 472 : index
    %c0_49 = arith.constant 0 : index
    %180 = vector.load %arg2[%c472, %c0_49] : memref<568x128xf32, #tpu.memory_space<vmem>>, vector<32x128xf32>
    %cst_50 = arith.constant dense<0.000000e+00> : vector<64x128xf32>
    %181 = tpu.matmul %179, %180, %cst_50 {dimension_numbers = #tpu.dot_dimension_numbers<[1], [0], [0], [1], [0, 0, 1, 1], [], []>} : vector<64x32xf32>, vector<32x128xf32>, vector<64x128xf32> -> vector<64x128xf32>
    %c504 = arith.constant 504 : index
    %c0_51 = arith.constant 0 : index
    %182 = vector.load %arg2[%c504, %c0_51] : memref<568x128xf32, #tpu.memory_space<vmem>>, vector<1x128xf32>
    %183 = vector.broadcast %182 : vector<1x128xf32> to vector<64x128xf32>
    %184 = arith.addf %181, %183 : vector<64x128xf32>
    %c0_52 = arith.constant 0 : index
    %c0_53 = arith.constant 0 : index
    %185 = vector.load %arg3[%c0_52, %c0_53] : memref<64x128xf32, #tpu.memory_space<vmem>>, vector<64x128xf32>
    tpu.vector_store %arg3[%c0_52, %c0_53], %184 {strides = array<i32>} : memref<64x128xf32, #tpu.memory_space<vmem>>, vector<64x128xf32>,
    return
  }
}

</mosaic_0001>

<bundles_post_ra>
// kernel: eq.22
= control target key start
LH: loop header
LB: loop body
LE: loop exit
PB: predicated region body
PF: predicated region fallthrough
CT: control target
= control target key end

     0   :  { %s59_s10 = smov 48   ;;  %s60_s11 = smov 32   ;;  %vm3_vm0 = vcmask 64512   ;;  %vm9_vm1 = vcmask 458112   ;;  %vm15_vm2 = vcmask 392512   ;;  %vm21_vm3 = vcmask 326912   ;;  %s99_s0 = inlined_call_operand.vmem [shape: s32[7,8], index: 0, kind: input, shape index: {}]   ;;  %s100_s1 = inlined_call_operand.vmem [shape: s32[56], index: 1, kind: output, shape index: {}]  }
   0x1   :  { %v47_v0 = vld [vmem:[%s99_s0 + $0x6] sm:$0x1]   ;;  %v49_v1 = vld [vmem:[%s99_s0 + $0x4] sm:$0x1]   ;;  %v48_v2 = vld [vmem:[%s99_s0 + $0x5] sm:$0x1]  }
   0x2   :  { %7 = vrot.lane.b32.xlu0 %v47_v0, %s59_s10  ;;  %19 = vrot.lane.b32.xlu1 %v49_v1, %s60_s11  ;;  %v50_v3 = vld [vmem:[%s99_s0 + $0x3] sm:$0x1]   ;;  %v2_v4 = vld [vmem:[%s99_s0] sm:$0x1]   ;;  %s61_s18 = smov 40   ;;  %s62_s19 = smov 24  }
   0x3   :  { %4 = vst.msk [vmem:[#allocation0] sm:$0x1] %vm3_vm0, %v2_v4   ;;  %v51_v5 = vld [vmem:[%s99_s0 + $0x2] sm:$0x1]   ;;  %v52_v6 = vld [vmem:[%s99_s0 + $0x1] sm:$0x1]  }
   0x4   :  { %s63_s0 = smov 16   ;;  %s64_s24 = smov 8   ;;  %vm27_vm4 = vcmask 261312   ;;  %vm33_vm5 = vcmask 195712   ;;  %vm39_vm6 = vcmask 130112  }
   0x6   :  { %13 = vrot.lane.b32.xlu0 %v48_v2, %s61_s18  ;;  %25 = vrot.lane.b32.xlu1 %v50_v3, %s62_s19 }
   0xa   :  { %31 = vrot.lane.b32.xlu0 %v51_v5, %s63_s0  ;;  %37 = vrot.lane.b32.xlu1 %v52_v6, %s64_s24 }
  0x74   :  { %v8_v7 = vpop.permute.xlu0 %7   ;;  %v20_v8 = vpop.permute.xlu1 %19  }
  0x75   :  { %10 = vst.msk [vmem:[#allocation0] sm:$0x1] %vm9_vm1, %v8_v7  }
  0x78   :  { %v14_v9 = vpop.permute.xlu0 %13   ;;  %v26_v10 = vpop.permute.xlu1 %25  }
  0x79   :  { %16 = vst.msk [vmem:[#allocation0] sm:$0x1] %vm15_vm2, %v14_v9  }
  0x7a   :  { %22 = vst.msk [vmem:[#allocation0] sm:$0x1] %vm21_vm3, %v20_v8  }
  0x7b   :  { %28 = vst.msk [vmem:[#allocation0] sm:$0x1] %vm27_vm4, %v26_v10  }
  0x7c   :  { %v32_v11 = vpop.permute.xlu0 %31   ;;  %v38_v12 = vpop.permute.xlu1 %37  }
  0x7d   :  { %34 = vst.msk [vmem:[#allocation0] sm:$0x1] %vm33_vm5, %v32_v11  }
  0x7e   :  { %40 = vst.msk [vmem:[#allocation0] sm:$0x1] %vm39_vm6, %v38_v12  }
  0x85   :  { %v44_v13 = vld [vmem:[#allocation0] sm:$0x1] }
  0x86   :  { %46 = vst [vmem:[%s100_s1] sm:$0x1] %v44_v13 }

// kernel: encoder_decoder_forward.1
= control target key start
LH: loop header
LB: loop body
LE: loop exit
PB: predicated region body
PF: predicated region fallthrough
CT: control target
= control target key end

     0   :  { %vm87_vm0 = vcmask 261120   ;;  %vm3159_vm1 = vmmov 0   ;;  %s3161_s28 = smov 64   ;;  %s3162_s29 = smov 32   ;;  %s3981_s2 = inlined_call_operand.vmem [shape: f32[568,128], index: 2, kind: input, shape index: {}]   ;;  %s3982_s0 = inlined_call_operand.vmem [shape: f32[512,32], index: 0, kind: input, shape index: {}]   ;;  %s3983_s1 = inlined_call_operand.vmem [shape: f32[8,512], index: 1, kind: input, shape index: {}]   ;;  %s3984_s3 = inlined_call_operand.vmem [shape: f32[64,128], index: 3, kind: output, shape index: {}]  }
   0x1   :  { %v78_v0 = vld [vmem:[%s3981_s2] sm:$0xff]  ;;  %v79_v1 = vld [vmem:[%s3981_s2 + $0x8] sm:$0xff]  ;;  %v80_v2 = vld [vmem:[%s3981_s2 + $0x10] sm:$0xff] }
   0x2   :  { %v2881_v3 = vpack.c.bf16 %v79_v1, %v78_v0  ;;  %v81_v4 = vld [vmem:[%s3981_s2 + $0x18] sm:$0xff]  ;;  %v14_v5 = vld [vmem:[%s3982_s0] sm:$0xff]  ;;  %v15_v7 = vld [vmem:[%s3982_s0 + $0x8] sm:$0xff] }
   0x3   :  { %v2885_v6 = vpack.c.bf16 %v81_v4, %v80_v2  ;;  %2545 = vmatprep.mubr.msk.f32.mxu0 %vm87_vm0, %v14_v5  ;;  %v16_v8 = vld [vmem:[%s3982_s0 + $0x10] sm:$0xff]  ;;  %v17_v9 = vld [vmem:[%s3982_s0 + $0x18] sm:$0xff]  ;;  %v18_v10 = vld [vmem:[%s3982_s0 + $0x20] sm:$0xff] }
   0x4   :  { %2882 = vmatprep.subr.bf16.mxu0 %v2881_v3  ;;  %v19_v11 = vld [vmem:[%s3982_s0 + $0x28] sm:$0xff]  ;;  %v20_v12 = vld [vmem:[%s3982_s0 + $0x30] sm:$0xff]  ;;  %v21_v13 = vld [vmem:[%s3982_s0 + $0x38] sm:$0xff] }
   0x5   :  { %2884 = vmatpush3.bf16.msra.mxu0 %v2881_v3  ;;  %v22_v14 = vld [vmem:[%s3982_s0 + $0x40] sm:$0xff]  ;;  %v23_v15 = vld [vmem:[%s3982_s0 + $0x48] sm:$0xff]  ;;  %v24_v16 = vld [vmem:[%s3982_s0 + $0x50] sm:$0xff] }
   0x6   :  { %2886 = vmatprep.subr.bf16.mxu0 %v2885_v6  ;;  %v25_v17 = vld [vmem:[%s3982_s0 + $0x58] sm:$0xff]  ;;  %v26_v18 = vld [vmem:[%s3982_s0 + $0x60] sm:$0xff]  ;;  %v27_v19 = vld [vmem:[%s3982_s0 + $0x68] sm:$0xff] }
   0x7   :  { %v28_v20 = vld [vmem:[%s3982_s0 + $0x70] sm:$0xff]  ;;  %v29_v21 = vld [vmem:[%s3982_s0 + $0x78] sm:$0xff]  ;;  %v30_v22 = vld [vmem:[%s3982_s0 + $0x80] sm:$0xff] }
   0x8   :  { %v31_v23 = vld [vmem:[%s3982_s0 + $0x88] sm:$0xff]  ;;  %v32_v24 = vld [vmem:[%s3982_s0 + $0x90] sm:$0xff]  ;;  %v33_v25 = vld [vmem:[%s3982_s0 + $0x98] sm:$0xff] }
   0x9   :  { %2888 = vmatpush3.bf16.msra.mxu0 %v2885_v6  ;;  %v34_v26 = vld [vmem:[%s3982_s0 + $0xa0] sm:$0xff]  ;;  %v35_v27 = vld [vmem:[%s3982_s0 + $0xa8] sm:$0xff]  ;;  %v36_v28 = vld [vmem:[%s3982_s0 + $0xb0] sm:$0xff] }
   0xa   :  { %v37_v29 = vld [vmem:[%s3982_s0 + $0xb8] sm:$0xff]  ;;  %v38_v30 = vld [vmem:[%s3982_s0 + $0xc0] sm:$0xff]  ;;  %v39_v31 = vld [vmem:[%s3982_s0 + $0xc8] sm:$0xff] }
   0xb   :  { %v40_v32 = vld [vmem:[%s3982_s0 + $0xd0] sm:$0xff]  ;;  %v41_v33 = vld [vmem:[%s3982_s0 + $0xd8] sm:$0xff]  ;;  %v42_v34 = vld [vmem:[%s3982_s0 + $0xe0] sm:$0xff] }
   0xc   :  { %2546 = vmatmul.mubr.msk.f32.vlgmr.msra.gmra.mrb[0].mxu0 %vm87_vm0, %v15_v7  ;;  %v43_v35 = vld [vmem:[%s3982_s0 + $0xe8] sm:$0xff]  ;;  %v44_v36 = vld [vmem:[%s3982_s0 + $0xf0] sm:$0xff]  ;;  %v45_v37 = vld [vmem:[%s3982_s0 + $0xf8] sm:$0xff] }
   0xd   :  { %2548 = vmatprep.mubr.msk.f32.mxu0 %vm87_vm0, %v16_v8  ;;  %v46_v38 = vld [vmem:[%s3982_s0 + $0x100] sm:$0xff]  ;;  %v47_v39 = vld [vmem:[%s3982_s0 + $0x108] sm:$0xff]  ;;  %v48_v40 = vld [vmem:[%s3982_s0 + $0x110] sm:$0xff] }
   0xe   :  { %v49_v41 = vld [vmem:[%s3982_s0 + $0x118] sm:$0xff]  ;;  %v50_v42 = vld [vmem:[%s3982_s0 + $0x120] sm:$0xff]  ;;  %v51_v43 = vld [vmem:[%s3982_s0 + $0x128] sm:$0xff] }
   0xf   :  { %v52_v44 = vld [vmem:[%s3982_s0 + $0x130] sm:$0xff]  ;;  %v53_v45 = vld [vmem:[%s3982_s0 + $0x138] sm:$0xff]  ;;  %v54_v46 = vld [vmem:[%s3982_s0 + $0x140] sm:$0xff] }
  0x10   :  { %2549 = vmatmul.mubr.msk.f32.gmra.mrb[2].mxu0 %vm87_vm0, %v17_v9  ;;  %v55_v47 = vld [vmem:[%s3982_s0 + $0x148] sm:$0xff]  ;;  %v56_v48 = vld [vmem:[%s3982_s0 + $0x150] sm:$0xff]  ;;  %v57_v49 = vld [vmem:[%s3982_s0 + $0x158] sm:$0xff] }
  0x11   :  { %2551 = vmatprep.mubr.msk.f32.mxu0 %vm87_vm0, %v18_v10  ;;  %v58_v50 = vld [vmem:[%s3982_s0 + $0x160] sm:$0xff]  ;;  %v59_v51 = vld [vmem:[%s3982_s0 + $0x168] sm:$0xff]  ;;  %v60_v52 = vld [vmem:[%s3982_s0 + $0x170] sm:$0xff] }
  0x12   :  { %v61_v53 = vld [vmem:[%s3982_s0 + $0x178] sm:$0xff]  ;;  %v62_v54 = vld [vmem:[%s3982_s0 + $0x180] sm:$0xff]  ;;  %v63_v55 = vld [vmem:[%s3982_s0 + $0x188] sm:$0xff] }
  0x13   :  { %v64_v56 = vld [vmem:[%s3982_s0 + $0x190] sm:$0xff]  ;;  %v65_v57 = vld [vmem:[%s3982_s0 + $0x198] sm:$0xff]  ;;  %v66_v58 = vld [vmem:[%s3982_s0 + $0x1a0] sm:$0xff] }
  0x14   :  { %2552 = vmatmul.mubr.msk.f32.gmra.mrb[4].mxu0 %vm87_vm0, %v19_v11  ;;  %v67_v59 = vld [vmem:[%s3982_s0 + $0x1a8] sm:$0xff]  ;;  %v68_v60 = vld [vmem:[%s3982_s0 + $0x1b0] sm:$0xff]  ;;  %v69_v61 = vld [vmem:[%s3982_s0 + $0x1b8] sm:$0xff] }
  0x15   :  { %2554 = vmatprep.mubr.msk.f32.mxu0 %vm87_vm0, %v20_v12  ;;  %v70_v62 = vld [vmem:[%s3982_s0 + $0x1c0] sm:$0xff]  ;;  %v71_v63 = vld [vmem:[%s3982_s0 + $0x1c8] sm:$0xff]  ;;  %v72_v0 = vld [vmem:[%s3982_s0 + $0x1d0] sm:$0xff] }
  0x16   :  { %v73_v1 = vld [vmem:[%s3982_s0 + $0x1d8] sm:$0xff]  ;;  %v74_v2 = vld [vmem:[%s3982_s0 + $0x1e0] sm:$0xff]  ;;  %v75_v3 = vld [vmem:[%s3982_s0 + $0x1e8] sm:$0xff] }
  0x17   :  { %v76_v4 = vld [vmem:[%s3982_s0 + $0x1f0] sm:$0xff]  ;;  %v77_v5 = vld [vmem:[%s3982_s0 + $0x1f8] sm:$0xff]  ;;  %v730_v6 = vld [vmem:[%s3983_s1 + $0x8] sm:$0xff] }
  0x18   :  { %2555 = vmatmul.mubr.msk.f32.gmra.mrb[6].mxu0 %vm87_vm0, %v21_v13  ;;  %797 = vmatprep.mubr.f32.mxu1 %v730_v6  ;;  %v3457_v7 = vld [vmem:[%s3981_s2 + $0x20] ss:$0 sm:$0xff] }
  0x19   :  { %2557 = vmatprep.mubr.msk.f32.mxu0 %vm87_vm0, %v22_v14 }
  0x1c   :  { %2558 = vmatmul.mubr.msk.f32.gmra.mrb[8].mxu0 %vm87_vm0, %v23_v15 }
  0x1d   :  { %2560 = vmatprep.mubr.msk.f32.mxu0 %vm87_vm0, %v24_v16 }
  0x20   :  { %2561 = vmatmul.mubr.msk.f32.gmra.mrb[10].mxu0 %vm87_vm0, %v25_v17 }
  0x21   :  { %2563 = vmatprep.mubr.msk.f32.mxu0 %vm87_vm0, %v26_v18 }
  0x24   :  { %2564 = vmatmul.mubr.msk.f32.gmra.mrb[12].mxu0 %vm87_vm0, %v27_v19 }
  0x25   :  { %2566 = vmatprep.mubr.msk.f32.mxu0 %vm87_vm0, %v28_v20 }
  0x28   :  { %2567 = vmatmul.mubr.msk.f32.gmra.mrb[14].mxu0 %vm87_vm0, %v29_v21 }
  0x29   :  { %2569 = vmatprep.mubr.msk.f32.mxu0 %vm87_vm0, %v30_v22 }
  0x2c   :  { %2570 = vmatmul.mubr.msk.f32.gmra.mrb[16].mxu0 %vm87_vm0, %v31_v23 }
  0x2d   :  { %2572 = vmatprep.mubr.msk.f32.mxu0 %vm87_vm0, %v32_v24 }
  0x30   :  { %2573 = vmatmul.mubr.msk.f32.gmra.mrb[18].mxu0 %vm87_vm0, %v33_v25 }
  0x31   :  { %2575 = vmatprep.mubr.msk.f32.mxu0 %vm87_vm0, %v34_v26 }
  0x34   :  { %2576 = vmatmul.mubr.msk.f32.gmra.mrb[20].mxu0 %vm87_vm0, %v35_v27 }
  0x35   :  { %2578 = vmatprep.mubr.msk.f32.mxu0 %vm87_vm0, %v36_v28 }
  0x38   :  { %2579 = vmatmul.mubr.msk.f32.gmra.mrb[22].mxu0 %vm87_vm0, %v37_v29 }
  0x39   :  { %2581 = vmatprep.mubr.msk.f32.mxu0 %vm87_vm0, %v38_v30 }
  0x3c   :  { %2582 = vmatmul.mubr.msk.f32.gmra.mrb[24].mxu0 %vm87_vm0, %v39_v31 }
  0x3d   :  { %2584 = vmatprep.mubr.msk.f32.mxu0 %vm87_vm0, %v40_v32 }
  0x40   :  { %2585 = vmatmul.mubr.msk.f32.gmra.mrb[26].mxu0 %vm87_vm0, %v41_v33 }
  0x41   :  { %2587 = vmatprep.mubr.msk.f32.mxu0 %vm87_vm0, %v42_v34 }
  0x44   :  { %2588 = vmatmul.mubr.msk.f32.gmra.mrb[28].mxu0 %vm87_vm0, %v43_v35 }
  0x45   :  { %2590 = vmatprep.mubr.msk.f32.mxu0 %vm87_vm0, %v44_v36 }
  0x48   :  { %2591 = vmatmul.mubr.msk.f32.gmra.mrb[30].mxu0 %vm87_vm0, %v45_v37 }
  0x49   :  { %2593 = vmatprep.mubr.msk.f32.mxu0 %vm87_vm0, %v46_v38 }
  0x4c   :  { %2594 = vmatmul.mubr.msk.f32.gmra.mrb[32].mxu0 %vm87_vm0, %v47_v39 }
  0x4d   :  { %2596 = vmatprep.mubr.msk.f32.mxu0 %vm87_vm0, %v48_v40 }
  0x50   :  { %2597 = vmatmul.mubr.msk.f32.gmra.mrb[34].mxu0 %vm87_vm0, %v49_v41 }
  0x51   :  { %2599 = vmatprep.mubr.msk.f32.mxu0 %vm87_vm0, %v50_v42 }
  0x54   :  { %2600 = vmatmul.mubr.msk.f32.gmra.mrb[36].mxu0 %vm87_vm0, %v51_v43 }
  0x55   :  { %2602 = vmatprep.mubr.msk.f32.mxu0 %vm87_vm0, %v52_v44 }
  0x58   :  { %2603 = vmatmul.mubr.msk.f32.gmra.mrb[38].mxu0 %vm87_vm0, %v53_v45 }
  0x59   :  { %2605 = vmatprep.mubr.msk.f32.mxu0 %vm87_vm0, %v54_v46 }
  0x5c   :  { %2606 = vmatmul.mubr.msk.f32.gmra.mrb[40].mxu0 %vm87_vm0, %v55_v47 }
  0x5d   :  { %2608 = vmatprep.mubr.msk.f32.mxu0 %vm87_vm0, %v56_v48 }
  0x60   :  { %2609 = vmatmul.mubr.msk.f32.gmra.mrb[42].mxu0 %vm87_vm0, %v57_v49 }
  0x61   :  { %2611 = vmatprep.mubr.msk.f32.mxu0 %vm87_vm0, %v58_v50 }
  0x64   :  { %2612 = vmatmul.mubr.msk.f32.gmra.mrb[44].mxu0 %vm87_vm0, %v59_v51 }
  0x65   :  { %2614 = vmatprep.mubr.msk.f32.mxu0 %vm87_vm0, %v60_v52 }
  0x68   :  { %2615 = vmatmul.mubr.msk.f32.gmra.mrb[46].mxu0 %vm87_vm0, %v61_v53 }
  0x69   :  { %2617 = vmatprep.mubr.msk.f32.mxu0 %vm87_vm0, %v62_v54 }
  0x6c   :  { %2618 = vmatmul.mubr.msk.f32.gmra.mrb[48].mxu0 %vm87_vm0, %v63_v55 }
  0x6d   :  { %2620 = vmatprep.mubr.msk.f32.mxu0 %vm87_vm0, %v64_v56 }
  0x70   :  { %2621 = vmatmul.mubr.msk.f32.gmra.mrb[50].mxu0 %vm87_vm0, %v65_v57 }
  0x71   :  { %2623 = vmatprep.mubr.msk.f32.mxu0 %vm87_vm0, %v66_v58 }
  0x74   :  { %2624 = vmatmul.mubr.msk.f32.gmra.mrb[52].mxu0 %vm87_vm0, %v67_v59 }
  0x75   :  { %2626 = vmatprep.mubr.msk.f32.mxu0 %vm87_vm0, %v68_v60 }
  0x78   :  { %2627 = vmatmul.mubr.msk.f32.gmra.mrb[54].mxu0 %vm87_vm0, %v69_v61 }
  0x79   :  { %2629 = vmatprep.mubr.msk.f32.mxu0 %vm87_vm0, %v70_v62 }
  0x7c   :  { %2630 = vmatmul.mubr.msk.f32.gmra.mrb[56].mxu0 %vm87_vm0, %v71_v63 }
  0x7d   :  { %2632 = vmatprep.mubr.msk.f32.mxu0 %vm87_vm0, %v72_v0 }
  0x80   :  { %2633 = vmatmul.mubr.msk.f32.gmra.mrb[58].mxu0 %vm87_vm0, %v73_v1 }
  0x81   :  { %2635 = vmatprep.mubr.msk.f32.mxu0 %vm87_vm0, %v74_v2 }
  0x84   :  { %2636 = vmatmul.mubr.msk.f32.gmra.mrb[60].mxu0 %vm87_vm0, %v75_v3 }
  0x85   :  { %2638 = vmatprep.mubr.msk.f32.mxu0 %vm87_vm0, %v76_v4 }
  0x88   :  { %2639 = vmatmul.mubr.msk.f32.gmra.mrb[62].mxu0 %vm87_vm0, %v77_v5 }
  0xdf   :  { %v2547_v8 = vpop.f32.mrb[0].mxu0 }
  0xe0   :  { %v352_v9 = vadd.f32 %v2547_v8, %v3457_v7  ;;  %v346_v10 = vpop.f32.mrb[1].mxu0 }
  0xe1   :  { %v347_v11 = vadd.f32 %v3457_v7, %v346_v10 }
  0xe2   :  { %v666_v12 = vmax.f32 %v352_v9, 0.0 }
  0xe3   :  { %v665_v13 = vmax.f32 %v347_v11, 0.0  ;;  %v2550_v14 = vpop.f32.mrb[2].mxu0 }
  0xe4   :  { %v362_v15 = vadd.f32 %v2550_v14, %v3457_v7  ;;  %v356_v16 = vpop.f32.mrb[3].mxu0 }
  0xe5   :  { %v357_v17 = vadd.f32 %v3457_v7, %v356_v16  ;;  %v2891_v18 = vpack.c.bf16 %v666_v12, %v665_v13 }
  0xe6   :  { %v668_v19 = vmax.f32 %v362_v15, 0.0 }
  0xe7   :  { %v667_v20 = vmax.f32 %v357_v17, 0.0  ;;  %v2553_v21 = vpop.f32.mrb[4].mxu0 }
  0xe8   :  { %v372_v22 = vadd.f32 %v2553_v21, %v3457_v7  ;;  %v366_v23 = vpop.f32.mrb[5].mxu0 }
  0xe9   :  { %v3464_v24 = vpack.c.bf16 %v668_v19, %v667_v20  ;;  %v367_v25 = vadd.f32 %v3457_v7, %v366_v23 }
  0xea   :  { %v670_v26 = vmax.f32 %v372_v22, 0.0 }
  0xeb   :  { %v669_v27 = vmax.f32 %v367_v25, 0.0  ;;  %v2556_v28 = vpop.f32.mrb[6].mxu0 }
  0xec   :  { %v382_v29 = vadd.f32 %v2556_v28, %v3457_v7  ;;  %v376_v30 = vpop.f32.mrb[7].mxu0 }
  0xed   :  { %v3468_v31 = vpack.c.bf16 %v670_v26, %v669_v27  ;;  %v377_v32 = vadd.f32 %v3457_v7, %v376_v30 }
  0xee   :  { %v672_v33 = vmax.f32 %v382_v29, 0.0 }
  0xef   :  { %v671_v34 = vmax.f32 %v377_v32, 0.0  ;;  %v2559_v35 = vpop.f32.mrb[8].mxu0 }
  0xf0   :  { %v392_v36 = vadd.f32 %v2559_v35, %v3457_v7  ;;  %v386_v37 = vpop.f32.mrb[9].mxu0 }
  0xf1   :  { %v3472_v38 = vpack.c.bf16 %v672_v33, %v671_v34  ;;  %v387_v39 = vadd.f32 %v3457_v7, %v386_v37 }
  0xf2   :  { %v674_v40 = vmax.f32 %v392_v36, 0.0 }
  0xf3   :  { %v673_v41 = vmax.f32 %v387_v39, 0.0  ;;  %v2562_v42 = vpop.f32.mrb[10].mxu0 }
  0xf4   :  { %v402_v43 = vadd.f32 %v2562_v42, %v3457_v7  ;;  %v396_v44 = vpop.f32.mrb[11].mxu0 }
  0xf5   :  { %v3476_v45 = vpack.c.bf16 %v674_v40, %v673_v41  ;;  %v397_v46 = vadd.f32 %v3457_v7, %v396_v44 }
  0xf6   :  { %v676_v47 = vmax.f32 %v402_v43, 0.0 }
  0xf7   :  { %v675_v48 = vmax.f32 %v397_v46, 0.0  ;;  %v2565_v49 = vpop.f32.mrb[12].mxu0 }
  0xf8   :  { %v412_v50 = vadd.f32 %v2565_v49, %v3457_v7  ;;  %v406_v51 = vpop.f32.mrb[13].mxu0 }
  0xf9   :  { %v3480_v52 = vpack.c.bf16 %v676_v47, %v675_v48  ;;  %v407_v53 = vadd.f32 %v3457_v7, %v406_v51 }
  0xfa   :  { %v678_v54 = vmax.f32 %v412_v50, 0.0 }
  0xfb   :  { %v677_v55 = vmax.f32 %v407_v53, 0.0  ;;  %v2568_v56 = vpop.f32.mrb[14].mxu0 }
  0xfc   :  { %v422_v57 = vadd.f32 %v2568_v56, %v3457_v7  ;;  %v416_v58 = vpop.f32.mrb[15].mxu0 }
  0xfd   :  { %v3484_v59 = vpack.c.bf16 %v678_v54, %v677_v55  ;;  %v417_v60 = vadd.f32 %v3457_v7, %v416_v58 }
  0xfe   :  { %v680_v61 = vmax.f32 %v422_v57, 0.0 }
  0xff   :  { %v679_v62 = vmax.f32 %v417_v60, 0.0  ;;  %v2571_v63 = vpop.f32.mrb[16].mxu0 }
 0x100   :  { %v432_v0 = vadd.f32 %v2571_v63, %v3457_v7  ;;  %v426_v1 = vpop.f32.mrb[17].mxu0 }
 0x101   :  { %v3488_v2 = vpack.c.bf16 %v680_v61, %v679_v62  ;;  %v427_v3 = vadd.f32 %v3457_v7, %v426_v1 }
 0x102   :  { %v682_v4 = vmax.f32 %v432_v0, 0.0 }
 0x103   :  { %v681_v5 = vmax.f32 %v427_v3, 0.0  ;;  %v2574_v6 = vpop.f32.mrb[18].mxu0 }
 0x104   :  { %v442_v8 = vadd.f32 %v2574_v6, %v3457_v7  ;;  %v436_v9 = vpop.f32.mrb[19].mxu0  ;;  %v732_v6 = vld [vmem:[%s3983_s1 + $0x18] sm:$0xff] }
 0x105   :  { %v437_v10 = vadd.f32 %v3457_v7, %v436_v9  ;;  %v2889_v11 = vpack.c.bf16 %v682_v4, %v681_v5  ;;  %v729_v4 = vld [vmem:[%s3983_s1] sm:$0xff] }
 0x106   :  { %v684_v12 = vmax.f32 %v442_v8, 0.0 }
 0x107   :  { %v683_v13 = vmax.f32 %v437_v10, 0.0  ;;  %v2577_v14 = vpop.f32.mrb[20].mxu0  ;;  %2890 = vmatprep.subr.bf16.mxu1 %v2889_v11 }
 0x108   :  { %v452_v15 = vadd.f32 %v2577_v14, %v3457_v7  ;;  %v446_v16 = vpop.f32.mrb[21].mxu0  ;;  %2892 = vmatpush3.bf16.msra.mxu1 %v2891_v18 }
 0x109   :  { %v2893_v17 = vpack.c.bf16 %v684_v12, %v683_v13  ;;  %v447_v19 = vadd.f32 %v3457_v7, %v446_v16 }
 0x10a   :  { %v686_v20 = vmax.f32 %v452_v15, 0.0 }
 0x10b   :  { %v685_v21 = vmax.f32 %v447_v19, 0.0  ;;  %v2580_v22 = vpop.f32.mrb[22].mxu0  ;;  %2894 = vmatprep.subr.bf16.mxu1 %v2893_v17 }
 0x10c   :  { %v462_v23 = vadd.f32 %v2580_v22, %v3457_v7  ;;  %v456_v25 = vpop.f32.mrb[23].mxu0  ;;  %2896 = vmatpush3.bf16.msra.mxu1 %v3464_v24 }
 0x10d   :  { %v2897_v26 = vpack.c.bf16 %v686_v20, %v685_v21  ;;  %v457_v27 = vadd.f32 %v3457_v7, %v456_v25 }
 0x10e   :  { %v688_v28 = vmax.f32 %v462_v23, 0.0 }
 0x10f   :  { %v687_v29 = vmax.f32 %v457_v27, 0.0  ;;  %v2583_v30 = vpop.f32.mrb[24].mxu0  ;;  %2898 = vmatprep.subr.bf16.mxu1 %v2897_v26 }
 0x110   :  { %v472_v18 = vadd.f32 %v2583_v30, %v3457_v7  ;;  %v466_v32 = vpop.f32.mrb[25].mxu0  ;;  %2900 = vmatpush3.bf16.msra.mxu1 %v3468_v31 }
 0x111   :  { %v2901_v33 = vpack.c.bf16 %v688_v28, %v687_v29  ;;  %v467_v34 = vadd.f32 %v3457_v7, %v466_v32 }
 0x112   :  { %v690_v35 = vmax.f32 %v472_v18, 0.0 }
 0x113   :  { %v689_v36 = vmax.f32 %v467_v34, 0.0  ;;  %v2586_v37 = vpop.f32.mrb[26].mxu0  ;;  %2902 = vmatprep.subr.bf16.mxu1 %v2901_v33 }
 0x114   :  { %v482_v24 = vadd.f32 %v2586_v37, %v3457_v7  ;;  %v476_v39 = vpop.f32.mrb[27].mxu0  ;;  %2904 = vmatpush3.bf16.msra.mxu1 %v3472_v38 }
 0x115   :  { %v2905_v40 = vpack.c.bf16 %v690_v35, %v689_v36  ;;  %v477_v41 = vadd.f32 %v3457_v7, %v476_v39 }
 0x116   :  { %v692_v42 = vmax.f32 %v482_v24, 0.0 }
 0x117   :  { %v691_v43 = vmax.f32 %v477_v41, 0.0  ;;  %v2589_v44 = vpop.f32.mrb[28].mxu0  ;;  %2906 = vmatprep.subr.bf16.mxu1 %v2905_v40 }
 0x118   :  { %v492_v31 = vadd.f32 %v2589_v44, %v3457_v7  ;;  %v486_v46 = vpop.f32.mrb[29].mxu0  ;;  %2908 = vmatpush3.bf16.msra.mxu1 %v3476_v45 }
 0x119   :  { %v2909_v47 = vpack.c.bf16 %v692_v42, %v691_v43  ;;  %v487_v48 = vadd.f32 %v3457_v7, %v486_v46 }
 0x11a   :  { %v694_v49 = vmax.f32 %v492_v31, 0.0 }
 0x11b   :  { %v693_v50 = vmax.f32 %v487_v48, 0.0  ;;  %v2592_v51 = vpop.f32.mrb[30].mxu0  ;;  %2910 = vmatprep.subr.bf16.mxu1 %v2909_v47 }
 0x11c   :  { %v502_v38 = vadd.f32 %v2592_v51, %v3457_v7  ;;  %v496_v53 = vpop.f32.mrb[31].mxu0  ;;  %2912 = vmatpush3.bf16.msra.mxu1 %v3480_v52 }
 0x11d   :  { %v2913_v54 = vpack.c.bf16 %v694_v49, %v693_v50  ;;  %v497_v55 = vadd.f32 %v3457_v7, %v496_v53 }
 0x11e   :  { %v696_v56 = vmax.f32 %v502_v38, 0.0 }
 0x11f   :  { %v695_v57 = vmax.f32 %v497_v55, 0.0  ;;  %v2595_v58 = vpop.f32.mrb[32].mxu0  ;;  %2914 = vmatprep.subr.bf16.mxu1 %v2913_v54 }
 0x120   :  { %v512_v45 = vadd.f32 %v2595_v58, %v3457_v7  ;;  %v506_v60 = vpop.f32.mrb[33].mxu0  ;;  %2916 = vmatpush3.bf16.msra.mxu1 %v3484_v59 }
 0x121   :  { %v2917_v61 = vpack.c.bf16 %v696_v56, %v695_v57  ;;  %v507_v62 = vadd.f32 %v3457_v7, %v506_v60 }
 0x122   :  { %v698_v63 = vmax.f32 %v512_v45, 0.0 }
 0x123   :  { %v697_v0 = vmax.f32 %v507_v62, 0.0  ;;  %v2598_v1 = vpop.f32.mrb[34].mxu0  ;;  %2918 = vmatprep.subr.bf16.mxu1 %v2917_v61 }
 0x124   :  { %v522_v52 = vadd.f32 %v2598_v1, %v3457_v7  ;;  %v516_v3 = vpop.f32.mrb[35].mxu0  ;;  %2920 = vmatpush3.bf16.msra.mxu1 %v3488_v2 }
 0x125   :  { %v3518_v5 = vpack.c.bf16 %v698_v63, %v697_v0  ;;  %v517_v59 = vadd.f32 %v3457_v7, %v516_v3 }
 0x126   :  { %v700_v8 = vmax.f32 %v522_v52, 0.0 }
 0x127   :  { %v699_v9 = vmax.f32 %v517_v59, 0.0  ;;  %v2601_v10 = vpop.f32.mrb[36].mxu0  ;;  %798 = vmatmul.mubr.f32.vlgmr.msra.gmra.mrb[0].mxu1 %v729_v4 }
 0x128   :  { %v532_v11 = vadd.f32 %v2601_v10, %v3457_v7  ;;  %v526_v12 = vpop.f32.mrb[37].mxu0  ;;  %867 = vmatprep.mubr.f32.mxu1 %v732_v6 }
 0x129   :  { %v3525_v2 = vpack.c.bf16 %v700_v8, %v699_v9  ;;  %v527_v13 = vadd.f32 %v3457_v7, %v526_v12 }
 0x12a   :  { %v702_v14 = vmax.f32 %v532_v11, 0.0 }
 0x12b   :  { %v701_v15 = vmax.f32 %v527_v13, 0.0  ;;  %v2604_v16 = vpop.f32.mrb[38].mxu0 }
 0x12c   :  { %v542_v17 = vadd.f32 %v2604_v16, %v3457_v7  ;;  %v536_v19 = vpop.f32.mrb[39].mxu0 }
 0x12d   :  { %v3529_v20 = vpack.c.bf16 %v702_v14, %v701_v15  ;;  %v537_v21 = vadd.f32 %v3457_v7, %v536_v19 }
 0x12e   :  { %v704_v22 = vmax.f32 %v542_v17, 0.0 }
 0x12f   :  { %v703_v23 = vmax.f32 %v537_v21, 0.0  ;;  %v2607_v25 = vpop.f32.mrb[40].mxu0 }
 0x130   :  { %v552_v26 = vadd.f32 %v2607_v25, %v3457_v7  ;;  %v546_v27 = vpop.f32.mrb[41].mxu0 }
 0x131   :  { %v3533_v28 = vpack.c.bf16 %v704_v22, %v703_v23  ;;  %v547_v29 = vadd.f32 %v3457_v7, %v546_v27 }
 0x132   :  { %v706_v30 = vmax.f32 %v552_v26, 0.0 }
 0x133   :  { %v705_v18 = vmax.f32 %v547_v29, 0.0  ;;  %v2610_v32 = vpop.f32.mrb[42].mxu0 }
 0x134   :  { %v562_v33 = vadd.f32 %v2610_v32, %v3457_v7  ;;  %v556_v34 = vpop.f32.mrb[43].mxu0 }
 0x135   :  { %v3537_v35 = vpack.c.bf16 %v706_v30, %v705_v18  ;;  %v557_v36 = vadd.f32 %v3457_v7, %v556_v34 }
 0x136   :  { %v708_v37 = vmax.f32 %v562_v33, 0.0 }
 0x137   :  { %v707_v24 = vmax.f32 %v557_v36, 0.0  ;;  %v2613_v39 = vpop.f32.mrb[44].mxu0 }
 0x138   :  { %v572_v40 = vadd.f32 %v2613_v39, %v3457_v7  ;;  %v566_v41 = vpop.f32.mrb[45].mxu0 }
 0x139   :  { %v3541_v42 = vpack.c.bf16 %v708_v37, %v707_v24  ;;  %v567_v43 = vadd.f32 %v3457_v7, %v566_v41 }
 0x13a   :  { %v710_v44 = vmax.f32 %v572_v40, 0.0 }
 0x13b   :  { %v709_v31 = vmax.f32 %v567_v43, 0.0  ;;  %v2616_v46 = vpop.f32.mrb[46].mxu0 }
 0x13c   :  { %v582_v47 = vadd.f32 %v2616_v46, %v3457_v7  ;;  %v576_v48 = vpop.f32.mrb[47].mxu0 }
 0x13d   :  { %v3545_v49 = vpack.c.bf16 %v710_v44, %v709_v31  ;;  %v577_v50 = vadd.f32 %v3457_v7, %v576_v48  ;;  %v731_v48 = vld [vmem:[%s3983_s1 + $0x10] sm:$0xff] }
 0x13e   :  { %v712_v51 = vmax.f32 %v582_v47, 0.0 }
 0x13f   :  { %v711_v38 = vmax.f32 %v577_v50, 0.0  ;;  %v2619_v53 = vpop.f32.mrb[48].mxu0  ;;  %v3158_v50 = vmov 0.0|0.0  }
 0x140   :  { %v592_v54 = vadd.f32 %v2619_v53, %v3457_v7  ;;  %v586_v55 = vpop.f32.mrb[49].mxu0 }
 0x141   :  { %v3549_v56 = vpack.c.bf16 %v712_v51, %v711_v38  ;;  %v587_v57 = vadd.f32 %v3457_v7, %v586_v55  ;;  %v876_v38 = vld [vmem:[%s3981_s2 + $0x40] sm:$0xff]  ;;  %v878_v55 = vld [vmem:[%s3981_s2 + $0x50] sm:$0xff] }
 0x142   :  { %v714_v58 = vmax.f32 %v592_v54, 0.0  ;;  %v877_v54 = vld [vmem:[%s3981_s2 + $0x48] sm:$0xff] }
 0x143   :  { %v713_v45 = vmax.f32 %v587_v57, 0.0  ;;  %v2622_v60 = vpop.f32.mrb[50].mxu0  ;;  %v879_v57 = vld [vmem:[%s3981_s2 + $0x58] sm:$0xff] }
 0x144   :  { %v602_v61 = vadd.f32 %v2622_v60, %v3457_v7  ;;  %v596_v62 = vpop.f32.mrb[51].mxu0  ;;  %v881_v60 = vld [vmem:[%s3981_s2 + $0x68] sm:$0xff] }
 0x145   :  { %v2921_v63 = vpack.c.bf16 %v714_v58, %v713_v45  ;;  %v597_v0 = vadd.f32 %v3457_v7, %v596_v62  ;;  %v880_v58 = vld [vmem:[%s3981_s2 + $0x60] sm:$0xff] }
 0x146   :  { %v716_v1 = vmax.f32 %v602_v61, 0.0  ;;  %v2963_v45 = vpack.c.bf16 %v880_v58, %v879_v57  ;;  %v882_v61 = vld [vmem:[%s3981_s2 + $0x70] sm:$0xff]  ;;  %v984_v57 = vld [vmem:[%s3981_s2 + $0x118] sm:$0xff] }
 0x147   :  { %v715_v52 = vmax.f32 %v597_v0, 0.0  ;;  %v2625_v3 = vpop.f32.mrb[52].mxu0  ;;  %2922 = vmatprep.subr.bf16.mxu1 %v2921_v63  ;;  %v2966_v62 = vpack.c.bf16 %v882_v61, %v881_v60  ;;  %v883_v63 = vld [vmem:[%s3981_s2 + $0x78] sm:$0xff]  ;;  %v884_v0 = vld [vmem:[%s3981_s2 + $0x80] sm:$0xff]  ;;  %v986_v60 = vld [vmem:[%s3981_s2 + $0x128] sm:$0xff] }
 0x148   :  { %v612_v4 = vadd.f32 %v2625_v3, %v3457_v7  ;;  %v606_v59 = vpop.f32.mrb[53].mxu0  ;;  %2924 = vmatpush3.bf16.msra.mxu1 %v3518_v5  ;;  %v886_v3 = vld [vmem:[%s3981_s2 + $0x90] sm:$0xff] }
 0x149   :  { %v2925_v6 = vpack.c.bf16 %v716_v1, %v715_v52  ;;  %v607_v8 = vadd.f32 %v3457_v7, %v606_v59  ;;  %v2969_v1 = vpack.c.bf16 %v884_v0, %v883_v63  ;;  %v885_v52 = vld [vmem:[%s3981_s2 + $0x88] sm:$0xff]  ;;  %v887_v59 = vld [vmem:[%s3981_s2 + $0x98] sm:$0xff]  ;;  %v1214_v0 = vld [vmem:[%s3981_s2 + $0x1c0] sm:$0xff] }
 0x14a   :  { %v718_v9 = vmax.f32 %v612_v4, 0.0  ;;  %v2972_v4 = vpack.c.bf16 %v886_v3, %v885_v52  ;;  %v1213_v63 = vld [vmem:[%s3981_s2 + $0x1b8] sm:$0xff]  ;;  %v1101_v3 = vld [vmem:[%s3981_s2 + $0x1a0] sm:$0xff] }
 0x14b   :  { %v717_v10 = vmax.f32 %v607_v8, 0.0  ;;  %v2628_v11 = vpop.f32.mrb[54].mxu0  ;;  %2926 = vmatprep.subr.bf16.mxu1 %v2925_v6  ;;  %v888_v6 = vld [vmem:[%s3981_s2 + $0xa0] sm:$0xff]  ;;  %v3750_v52 = vpack.c.bf16 %v1214_v0, %v1213_v63 }
 0x14c   :  { %v622_v12 = vadd.f32 %v2628_v11, %v3457_v7  ;;  %v616_v13 = vpop.f32.mrb[55].mxu0  ;;  %2928 = vmatpush3.bf16.msra.mxu1 %v3525_v2  ;;  %v2975_v8 = vpack.c.bf16 %v888_v6, %v887_v59  ;;  %v1088_v11 = vld [vmem:[%s3981_s2 + $0x138] sm:$0xff]  ;;  %v966_v59 = vld [vmem:[%s3981_s2 + $0x210] sm:$0xff] }
 0x14d   :  { %v2929_v14 = vpack.c.bf16 %v718_v9, %v717_v10  ;;  %v617_v15 = vadd.f32 %v3457_v7, %v616_v13  ;;  %v3160_v9 = vmov 0.0   ;;  %v1087_v10 = vld [vmem:[%s3981_s2 + $0x130] sm:$0xff] }
 0x14e   :  { %v720_v16 = vmax.f32 %v622_v12, 0.0  ;;  %v1089_v12 = vld [vmem:[%s3981_s2 + $0x140] sm:$0xff]  ;;  %v3001_v13 = vpack.c.bf16 %v1088_v11, %v1087_v10  ;;  %v1216_v10 = vld [vmem:[%s3981_s2 + $0x1d0] sm:$0xff] }
 0x14f   :  { %v719_v17 = vmax.f32 %v617_v15, 0.0  ;;  %v2631_v19 = vpop.f32.mrb[56].mxu0  ;;  %2930 = vmatprep.subr.bf16.mxu1 %v2929_v14  ;;  %v1090_v14 = vld [vmem:[%s3981_s2 + $0x148] sm:$0xff] }
 0x150   :  { %v632_v5 = vadd.f32 %v2631_v19, %v3457_v7  ;;  %v626_v21 = vpop.f32.mrb[57].mxu0  ;;  %2932 = vmatpush3.bf16.msra.mxu1 %v3529_v20  ;;  %v3005_v15 = vpack.c.bf16 %v1090_v14, %v1089_v12  ;;  %3002 = vmatprep.subr.bf16.mxu0 %v3001_v13  ;;  %v967_v12 = vld [vmem:[%s3981_s2 + $0x218] sm:$0xff]  ;;  %v969_v14 = vld [vmem:[%s3981_s2 + $0x228] sm:$0xff] }
 0x151   :  { %v2933_v22 = vpack.c.bf16 %v720_v16, %v719_v17  ;;  %v627_v23 = vadd.f32 %v3457_v7, %v626_v21  ;;  %v1091_v16 = vld [vmem:[%s3981_s2 + $0x150] sm:$0xff]  ;;  %v1092_v17 = vld [vmem:[%s3981_s2 + $0x158] sm:$0xff]  ;;  %3004 = vmatpush3.bf16.msra.mxu0 %v3001_v13  ;;  %v1094_v21 = vld [vmem:[%s3981_s2 + $0x168] sm:$0xff] }
 0x152   :  { %v722_v25 = vmax.f32 %v632_v5, 0.0  ;;  %3006 = vmatprep.subr.bf16.mxu0 %v3005_v15  ;;  %v3009_v19 = vpack.c.bf16 %v1092_v17, %v1091_v16  ;;  %v1093_v5 = vld [vmem:[%s3981_s2 + $0x160] sm:$0xff]  ;;  %v2257_v16 = vld [vmem:[%s3981_s2 + $0xa8] ss:$0 sm:$0xff] }
 0x153   :  { %v721_v26 = vmax.f32 %v627_v23, 0.0  ;;  %v2634_v27 = vpop.f32.mrb[58].mxu0  ;;  %2934 = vmatprep.subr.bf16.mxu1 %v2933_v22  ;;  %v3013_v22 = vpack.c.bf16 %v1094_v21, %v1093_v5  ;;  %v1095_v23 = vld [vmem:[%s3981_s2 + $0x170] sm:$0xff]  ;;  %v968_v13 = vld [vmem:[%s3981_s2 + $0x220] sm:$0xff] }
 0x154   :  { %v642_v2 = vadd.f32 %v2634_v27, %v3457_v7  ;;  %v636_v29 = vpop.f32.mrb[59].mxu0  ;;  %2936 = vmatpush3.bf16.msra.mxu1 %v3533_v28  ;;  %v1097_v27 = vld [vmem:[%s3981_s2 + $0x180] sm:$0xff] }
 0x155   :  { %v2937_v30 = vpack.c.bf16 %v722_v25, %v721_v26  ;;  %v637_v18 = vadd.f32 %v3457_v7, %v636_v29  ;;  %3008 = vmatpush3.bf16.msra.mxu0 %v3005_v15  ;;  %v1096_v25 = vld [vmem:[%s3981_s2 + $0x178] sm:$0xff]  ;;  %v970_v15 = vld [vmem:[%s3981_s2 + $0x230] sm:$0xff] }
 0x156   :  { %v724_v32 = vmax.f32 %v642_v2, 0.0  ;;  %3010 = vmatprep.subr.bf16.mxu0 %v3009_v19  ;;  %v3017_v26 = vpack.c.bf16 %v1096_v25, %v1095_v23  ;;  %v1098_v2 = vld [vmem:[%s3981_s2 + $0x188] sm:$0xff] }
 0x157   :  { %v723_v33 = vmax.f32 %v637_v18, 0.0  ;;  %v2637_v34 = vpop.f32.mrb[60].mxu0  ;;  %2938 = vmatprep.subr.bf16.mxu1 %v2937_v30  ;;  %v3021_v29 = vpack.c.bf16 %v1098_v2, %v1097_v27  ;;  %v1099_v30 = vld [vmem:[%s3981_s2 + $0x190] sm:$0xff]  ;;  %v1100_v18 = vld [vmem:[%s3981_s2 + $0x198] sm:$0xff] }
 0x158   :  { %v652_v20 = vadd.f32 %v2637_v34, %v3457_v7  ;;  %v646_v36 = vpop.f32.mrb[61].mxu0  ;;  %2940 = vmatpush3.bf16.msra.mxu1 %v3537_v35 }
 0x159   :  { %v2941_v37 = vpack.c.bf16 %v724_v32, %v723_v33  ;;  %v647_v24 = vadd.f32 %v3457_v7, %v646_v36  ;;  %3012 = vmatpush3.bf16.msra.mxu0 %v3009_v19  ;;  %v3025_v32 = vpack.c.bf16 %v1100_v18, %v1099_v30 }
 0x15a   :  { %v726_v39 = vmax.f32 %v652_v20, 0.0  ;;  %3014 = vmatprep.subr.bf16.mxu0 %v3013_v22 }
 0x15b   :  { %v725_v40 = vmax.f32 %v647_v24, 0.0  ;;  %v2640_v41 = vpop.f32.mrb[62].mxu0  ;;  %2942 = vmatprep.subr.bf16.mxu1 %v2941_v37  ;;  %v971_v37 = vld [vmem:[%s3981_s2 + $0xb0] sm:$0xff]  ;;  %v972_v24 = vld [vmem:[%s3981_s2 + $0xb8] sm:$0xff] }
 0x15c   :  { %v662_v28 = vadd.f32 %v2640_v41, %v3457_v7  ;;  %v656_v43 = vpop.f32.mrb[63].mxu0  ;;  %2944 = vmatpush3.bf16.msra.mxu1 %v3541_v42  ;;  %v873_v42 = vld [vmem:[%s3981_s2 + $0x28] sm:$0xff]  ;;  %v2978_v41 = vpack.c.bf16 %v972_v24, %v971_v37  ;;  %v3817_v24 = vld [vmem:[%s3981_s2 + $0x1b0] ss:$0 sm:$0xff] }
 0x15d   :  { %v2945_v44 = vpack.c.bf16 %v726_v39, %v725_v40  ;;  %v657_v31 = vadd.f32 %v3457_v7, %v656_v43  ;;  %v874_v7 = vld [vmem:[%s3981_s2 + $0x30] sm:$0xff]  ;;  %3016 = vmatpush3.bf16.msra.mxu0 %v3013_v22  ;;  %v973_v43 = vld [vmem:[%s3981_s2 + $0xc0] sm:$0xff] }
 0x15e   :  { %v728_v46 = vmax.f32 %v662_v28, 0.0  ;;  %v2954_v51 = vpack.c.bf16 %v874_v7, %v873_v42  ;;  %3018 = vmatprep.subr.bf16.mxu0 %v3017_v26  ;;  %v978_v42 = vld [vmem:[%s3981_s2 + $0xe8] sm:$0xff] }
 0x15f   :  { %v727_v47 = vmax.f32 %v657_v31, 0.0  ;;  %2946 = vmatprep.subr.bf16.mxu1 %v2945_v44  ;;  %v974_v44 = vld [vmem:[%s3981_s2 + $0xc8] sm:$0xff] }
 0x160   :  { %2948 = vmatpush3.bf16.msra.mxu1 %v3545_v49  ;;  %v875_v49 = vld [vmem:[%s3981_s2 + $0x38] sm:$0xff]  ;;  %v2981_v31 = vpack.c.bf16 %v974_v44, %v973_v43 }
 0x161   :  { %v2949_v35 = vpack.c.bf16 %v728_v46, %v727_v47  ;;  %v2957_v53 = vpack.c.bf16 %v876_v38, %v875_v49  ;;  %3020 = vmatpush3.bf16.msra.mxu0 %v3017_v26  ;;  %v975_v46 = vld [vmem:[%s3981_s2 + $0xd0] sm:$0xff]  ;;  %v976_v47 = vld [vmem:[%s3981_s2 + $0xd8] sm:$0xff] }
 0x162   :  { %3022 = vmatprep.subr.bf16.mxu0 %v3021_v29  ;;  %v979_v49 = vld [vmem:[%s3981_s2 + $0xf0] sm:$0xff] }
 0x163   :  { %2950 = vmatprep.subr.bf16.mxu1 %v2949_v35  ;;  %v2984_v35 = vpack.c.bf16 %v976_v47, %v975_v46 }
 0x164   :  { %2952 = vmatpush3.bf16.msra.mxu1 %v3549_v56  ;;  %v2960_v56 = vpack.c.bf16 %v878_v55, %v877_v54  ;;  %v982_v54 = vld [vmem:[%s3981_s2 + $0x108] sm:$0xff] }
 0x165   :  { %2953 = vmatprep.subr.bf16.mxu1 %v3158_v50  ;;  %3024 = vmatpush3.bf16.msra.mxu0 %v3021_v29 }
 0x166   :  { %3026 = vmatprep.subr.bf16.mxu0 %v3025_v32 }
 0x167   :  { %868 = vmatmul.mubr.f32.vlgmr.msra.gmra.mrb[2].mxu1 %v731_v48  ;;  %v977_v48 = vld [vmem:[%s3981_s2 + $0xe0] sm:$0xff] }
 0x168   :  { %2955 = vmatpush3.bf16.msra.mxu1 %v2954_v51  ;;  %2673 = vmatprep.mubr.msk.f32.mxu1 %vm3159_vm1, %v3160_v9  ;;  %v2987_v7 = vpack.c.bf16 %v978_v42, %v977_v48  ;;  %v980_v51 = vld [vmem:[%s3981_s2 + $0xf8] sm:$0xff] }
 0x169   :  { %2956 = vmatprep.subr.bf16.mxu1 %v3158_v50  ;;  %3028 = vmatpush3.bf16.msra.mxu0 %v3025_v32  ;;  %v2990_v38 = vpack.c.bf16 %v980_v51, %v979_v49 }
 0x16c   :  { %2958 = vmatpush3.bf16.msra.mxu1 %v2957_v53  ;;  %v981_v53 = vld [vmem:[%s3981_s2 + $0x100] sm:$0xff] }
 0x16d   :  { %2959 = vmatprep.subr.bf16.mxu1 %v3158_v50  ;;  %v2993_v55 = vpack.c.bf16 %v982_v54, %v981_v53 }
 0x170   :  { %2961 = vmatpush3.bf16.msra.mxu1 %v2960_v56  ;;  %v983_v56 = vld [vmem:[%s3981_s2 + $0x110] sm:$0xff] }
 0x171   :  { %2962 = vmatprep.subr.bf16.mxu1 %v3158_v50  ;;  %v2996_v58 = vpack.c.bf16 %v984_v57, %v983_v56 }
 0x174   :  { %2964 = vmatpush3.bf16.msra.mxu1 %v2963_v45  ;;  %v985_v45 = vld [vmem:[%s3981_s2 + $0x120] sm:$0xff] }
 0x175   :  { %2965 = vmatprep.subr.bf16.mxu1 %v3158_v50  ;;  %v2999_v61 = vpack.c.bf16 %v986_v60, %v985_v45 }
 0x178   :  { %2967 = vmatpush3.bf16.msra.mxu1 %v2966_v62  ;;  %v964_v62 = vld [vmem:[%s3981_s2 + $0x200] sm:$0xff] }
 0x179   :  { %2968 = vmatprep.subr.bf16.mxu1 %v3158_v50 }
 0x17c   :  { %2970 = vmatpush3.bf16.msra.mxu1 %v2969_v1  ;;  %v965_v1 = vld [vmem:[%s3981_s2 + $0x208] sm:$0xff] }
 0x17d   :  { %2971 = vmatprep.subr.bf16.mxu1 %v3158_v50 }
 0x180   :  { %2973 = vmatpush3.bf16.msra.mxu1 %v2972_v4  ;;  %v1102_v4 = vld [vmem:[%s3981_s2 + $0x1a8] sm:$0xff] }
 0x181   :  { %2974 = vmatprep.subr.bf16.mxu1 %v3158_v50  ;;  %v3029_v6 = vpack.c.bf16 %v1102_v4, %v1101_v3 }
 0x183   :  { %3030 = vmatprep.subr.bf16.mxu0 %v3029_v6 }
 0x184   :  { %2976 = vmatpush3.bf16.msra.mxu1 %v2975_v8  ;;  %v1215_v8 = vld [vmem:[%s3981_s2 + $0x1c8] sm:$0xff]  ;;  %3032 = vmatpush3.bf16.msra.mxu0 %v3029_v6 }
 0x185   :  { %2977 = vmatprep.subr.bf16.mxu1 %v3158_v50  ;;  %v3770_v11 = vpack.c.bf16 %v1216_v10, %v1215_v8  ;;  %3045 = vmatprep.subr.bf16.mxu0 %v3158_v50 }
 0x1fa   :  { %v2383_v33 = vpop.f32.mrb[0].mxu1 }
 0x1fb   :  { %v2384_v34 = vpop.f32.mrb[1].mxu1 }
 0x1fc   :  { %v2385_v20 = vadd.f32 %v2384_v34, %v2383_v33 }
 0x23a   :  { %v2418_v36 = vpop.f32.mrb[2].mxu1 }
 0x23b   :  { %v2419_v39 = vpop.f32.mrb[3].mxu1 }
 0x23c   :  { %v2420_v40 = vadd.f32 %v2419_v39, %v2418_v36 }
 0x23e   :  { %v870_v28 = vadd.f32 %v2420_v40, %v2385_v20 }
 0x240   :  { %2674 = vmatmul.mubr.f32.vlgmr.msra.gmra.mrb[4].mxu1 %v870_v28 }
 0x241   :  { %2979 = vmatpush3.bf16.msra.mxu1 %v2978_v41  ;;  %2708 = vmatprep.mubr.msk.f32.mxu1 %vm3159_vm1, %v3160_v9 }
 0x242   :  { %2980 = vmatprep.subr.bf16.mxu1 %v3158_v50 }
 0x245   :  { %2982 = vmatpush3.bf16.msra.mxu1 %v2981_v31 }
 0x246   :  { %2983 = vmatprep.subr.bf16.mxu1 %v3158_v50 }
 0x249   :  { %2985 = vmatpush3.bf16.msra.mxu1 %v2984_v35 }
 0x24a   :  { %2986 = vmatprep.subr.bf16.mxu1 %v3158_v50 }
 0x24d   :  { %2988 = vmatpush3.bf16.msra.mxu1 %v2987_v7 }
 0x24e   :  { %2989 = vmatprep.subr.bf16.mxu1 %v3158_v50 }
 0x251   :  { %2991 = vmatpush3.bf16.msra.mxu1 %v2990_v38 }
 0x252   :  { %2992 = vmatprep.subr.bf16.mxu1 %v3158_v50 }
 0x255   :  { %2994 = vmatpush3.bf16.msra.mxu1 %v2993_v55 }
 0x256   :  { %2995 = vmatprep.subr.bf16.mxu1 %v3158_v50 }
 0x259   :  { %2997 = vmatpush3.bf16.msra.mxu1 %v2996_v58 }
 0x25a   :  { %2998 = vmatprep.subr.bf16.mxu1 %v3158_v50 }
 0x25d   :  { %3000 = vmatpush3.bf16.msra.mxu1 %v2999_v61 }
 0x25e   :  { %3033 = vmatprep.subr.bf16.mxu1 %v3158_v50 }
 0x260   :  { %2709 = vmatmul.mubr.f32.vlgmr.msra.gmra.mrb[6].mxu1 %v964_v62 }
 0x261   :  { %2711 = vmatprep.mubr.msk.f32.mxu1 %vm3159_vm1, %v3160_v9  ;;  %3035 = vmatpush3.bf16.msra.mxu1 %v3750_v52 }
 0x262   :  { %3036 = vmatprep.subr.bf16.mxu1 %v3158_v50 }
 0x264   :  { %2712 = vmatmul.mubr.f32.gmra.mrb[8].mxu1 %v965_v1 }
 0x265   :  { %2714 = vmatprep.mubr.msk.f32.mxu1 %vm3159_vm1, %v3160_v9  ;;  %3038 = vmatpush3.bf16.msra.mxu1 %v3770_v11 }
 0x266   :  { %3039 = vmatprep.subr.bf16.mxu1 %v3158_v50 }
 0x268   :  { %2715 = vmatmul.mubr.f32.gmra.mrb[10].mxu1 %v966_v59 }
 0x269   :  { %2717 = vmatprep.mubr.msk.f32.mxu1 %vm3159_vm1, %v3160_v9 }
 0x26c   :  { %2718 = vmatmul.mubr.f32.gmra.mrb[12].mxu1 %v967_v12 }
 0x26d   :  { %2720 = vmatprep.mubr.msk.f32.mxu1 %vm3159_vm1, %v3160_v9 }
 0x270   :  { %2721 = vmatmul.mubr.f32.gmra.mrb[14].mxu1 %v968_v13 }
 0x271   :  { %2723 = vmatprep.mubr.msk.f32.mxu1 %vm3159_vm1, %v3160_v9 }
 0x274   :  { %2724 = vmatmul.mubr.f32.gmra.mrb[16].mxu1 %v969_v14 }
 0x275   :  { %2726 = vmatprep.mubr.msk.f32.mxu1 %vm3159_vm1, %v3160_v9 }
 0x278   :  { %2727 = vmatmul.mubr.f32.gmra.mrb[18].mxu1 %v970_v15 }
 0x279   :  { %2781 = vmatprep.mubr.msk.f32.mxu1 %vm3159_vm1, %v3160_v9 }
 0x27c   :  { %2782 = vmatmul.mubr.f32.vlgmr.msra.gmra.mrb[20].mxu1 %v3160_v9 }
 0x27d   :  { %3041 = vmatpush3.bf16.msra.mxu1 %v3750_v52  ;;  %2792 = vmatprep.mubr.msk.f32.mxu1 %vm3159_vm1, %v3160_v9 }
 0x27e   :  { %3042 = vmatprep.subr.bf16.mxu1 %v3158_v50 }
 0x281   :  { %3044 = vmatpush3.bf16.msra.mxu1 %v3770_v11 }
 0x282   :  { %3051 = vmatprep.subr.bf16.mxu1 %v3158_v50 }
 0x313   :  { %v960_v17 = vpop.f32.mrb[4].mxu1 }
 0x314   :  { %v961_v19 = vadd.f32 %v2257_v16, %v960_v17  ;;  %v2675_v5 = vpop.f32.mrb[5].mxu1 }
 0x316   :  { %2761 = vmatprep.mubr.f32.mxu0 %v961_v19 }
 0x333   :  { %v1053_v21 = vpop.f32.mrb[6].mxu1 }
 0x334   :  { %v2710_v22 = vpop.f32.mrb[7].mxu1  ;;  %2762 = vmatmul.mubr.f32.vlgmr.msra.gmra.mrb[64].mxu0 %v1053_v21 }
 0x335   :  { %3047 = vmatpush3.bf16.msra.mxu0 %v3750_v52 }
 0x336   :  { %3048 = vmatprep.subr.bf16.mxu0 %v3158_v50 }
 0x337   :  { %v1058_v23 = vpop.f32.mrb[8].mxu1 }
 0x338   :  { %v2713_v25 = vpop.f32.mrb[9].mxu1  ;;  %2764 = vmatprep.mubr.f32.mxu0 %v1058_v23 }
 0x339   :  { %3050 = vmatpush3.bf16.msra.mxu0 %v3770_v11 }
 0x33a   :  { %3057 = vmatprep.subr.bf16.mxu0 %v3158_v50 }
 0x33b   :  { %v1063_v26 = vpop.f32.mrb[10].mxu1 }
 0x33c   :  { %v2716_v27 = vpop.f32.mrb[11].mxu1  ;;  %2765 = vmatmul.mubr.f32.gmra.mrb[66].mxu0 %v1063_v26 }
 0x33f   :  { %v1068_v2 = vpop.f32.mrb[12].mxu1 }
 0x340   :  { %v2719_v29 = vpop.f32.mrb[13].mxu1  ;;  %2767 = vmatprep.mubr.f32.mxu0 %v1068_v2 }
 0x343   :  { %v1073_v30 = vpop.f32.mrb[14].mxu1 }
 0x344   :  { %v2722_v18 = vpop.f32.mrb[15].mxu1  ;;  %2768 = vmatmul.mubr.f32.gmra.mrb[68].mxu0 %v1073_v30 }
 0x347   :  { %v1078_v32 = vpop.f32.mrb[16].mxu1 }
 0x348   :  { %v2725_v33 = vpop.f32.mrb[17].mxu1  ;;  %2770 = vmatprep.mubr.f32.mxu0 %v1078_v32 }
 0x34b   :  { %v1083_v34 = vpop.f32.mrb[18].mxu1 }
 0x34c   :  { %v2728_v20 = vpop.f32.mrb[19].mxu1  ;;  %2771 = vmatmul.mubr.f32.gmra.mrb[70].mxu0 %v1083_v34 }
 0x34d   :  { %2803 = vmatprep.mubr.msk.f32.mxu0 %vm3159_vm1, %v3160_v9 }
 0x34f   :  { %v1286_v36 = vpop.f32.mrb[20].mxu1 }
 0x350   :  { %v2783_v37 = vpop.f32.mrb[21].mxu1 }
 0x407   :  { %v2763_v39 = vpop.f32.mrb[64].mxu0 }
 0x408   :  { %v1174_v40 = vpop.f32.mrb[65].mxu0  ;;  %v1180_v61 = vadd.f32 %v2763_v39, %v3817_v24 }
 0x409   :  { %v1175_v41 = vadd.f32 %v3817_v24, %v1174_v40 }
 0x40b   :  { %v1290_v28 = vadd.f32 %v1286_v36, %v1175_v41 }
 0x40d   :  { %3094 = vtanh.f32 %v1290_v28  ;;  %v2259_v42 = vmul.f32 -1.442695, %v1290_v28 }
 0x40f   :  { %v3821_v44 = vpop.f32.mrb[66].mxu0  ;;  %3096 = vpow2.f32 %v2259_v42 }
 0x410   :  { %v3823_v31 = vpop.f32.mrb[67].mxu0  ;;  %v1190_v40 = vadd.f32 %v3821_v44, %v3817_v24 }
 0x411   :  { %v1185_v5 = vadd.f32 %v3817_v24, %v3823_v31 }
 0x417   :  { %v3095_v43 = vpop.eup %3094  ;;  %v3825_v46 = vpop.f32.mrb[68].mxu0 }
 0x418   :  { %1300 = vrot.lane.b32.xlu0 %v3095_v43, %s3161_s28  ;;  %v3827_v47 = vpop.f32.mrb[69].mxu0 }
 0x419   :  { %v3097_v7 = vpop.eup %3096 }
 0x41a   :  { %v1294_v49 = vadd.f32 1.0, %v3097_v7 }
 0x41c   :  { %3098 = vrcp.f32 %v1294_v49 }
 0x41f   :  { %v3829_v35 = vpop.f32.mrb[70].mxu0 }
 0x420   :  { %v3831_v48 = vpop.f32.mrb[71].mxu0 }
 0x426   :  { %v3099_v51 = vpop.eup %3098 }
 0x427   :  { %v1298_v54 = vmul.f32 0.0, %v3099_v51 }
 0x48a   :  { %v1301_v38 = vpop.permute.xlu0 %1300 }
 0x48b   :  { %v1303_v53 = vmul.f32 %v3099_v51, %v1301_v38 }
 0x48d   :  { %1305 = vrot.lane.b32.xlu0 %v1303_v53, %s3162_s29 }
 0x4ff   :  { %v1306_v55 = vpop.permute.xlu0 %1305 }
 0x500   :  { %v1308_v56 = vadd.f32 %v1306_v55, %v1298_v54 }
 0x502   :  { %3100 = vtanh.f32 %v1308_v56 }
 0x50c   :  { %v3101_v57 = vpop.eup %3100 }
 0x50d   :  { %1311 = vrot.lane.b32.xlu1 %v3101_v57, %s3161_s28 }
 0x57f   :  { %v1312_v58 = vpop.permute.xlu1 %1311 }
 0x580   :  { %v1314_v45 = vmul.f32 %v3099_v51, %v1312_v58 }
 0x582   :  { %1316 = vrot.lane.b32.xlu1 %v1314_v45, %s3162_s29 }
 0x5f4   :  { %v1317_v60 = vpop.permute.xlu1 %1316 }
 0x5f5   :  { %1319 = vst.msk [vmem:[#allocation2] sm:$0xff] %vm87_vm0, %v1317_v60  ;;  %2793 = vmatmul.mubr.msk.f32.vlgmr.msra.gmra.mrb[22].mxu1 %vm87_vm0, %v1317_v60  ;;  %v1195_v60 = vadd.f32 %v3817_v24, %v3827_v47 }
 0x5f6   :  { %3053 = vmatpush3.bf16.msra.mxu1 %v3750_v52  ;;  %2814 = vmatprep.mubr.msk.f32.mxu1 %vm3159_vm1, %v3160_v9 }
 0x5f7   :  { %3054 = vmatprep.subr.bf16.mxu1 %v3158_v50 }
 0x5fa   :  { %3056 = vmatpush3.bf16.msra.mxu1 %v3770_v11 }
 0x5fb   :  { %3063 = vmatprep.subr.bf16.mxu1 %v3158_v50 }
 0x6c8   :  { %v1388_v62 = vpop.f32.mrb[22].mxu1 }
 0x6c9   :  { %v1392_v63 = vadd.f32 %v1388_v62, %v1180_v61  ;;  %v2794_v0 = vpop.f32.mrb[23].mxu1 }
 0x6cb   :  { %3102 = vtanh.f32 %v1392_v63  ;;  %v2261_v3 = vmul.f32 -1.442695, %v1392_v63 }
 0x6cd   :  { %3104 = vpow2.f32 %v2261_v3 }
 0x6d5   :  { %v3103_v1 = vpop.eup %3102 }
 0x6d6   :  { %1402 = vrot.lane.b32.xlu0 %v3103_v1, %s3161_s28 }
 0x6d7   :  { %v3105_v4 = vpop.eup %3104 }
 0x6d8   :  { %v1396_v59 = vadd.f32 1.0, %v3105_v4 }
 0x6da   :  { %3106 = vrcp.f32 %v1396_v59 }
 0x6e4   :  { %v3107_v6 = vpop.eup %3106 }
 0x6e5   :  { %v1400_v12 = vmul.f32 %v3107_v6, %v1308_v56 }
 0x748   :  { %v1403_v8 = vpop.permute.xlu0 %1402 }
 0x749   :  { %v1405_v10 = vmul.f32 %v3107_v6, %v1403_v8 }
 0x74b   :  { %1407 = vrot.lane.b32.xlu1 %v1405_v10, %s3162_s29 }
 0x7bd   :  { %v1408_v13 = vpop.permute.xlu1 %1407 }
 0x7be   :  { %v1410_v14 = vadd.f32 %v1408_v13, %v1400_v12 }
 0x7c0   :  { %3108 = vtanh.f32 %v1410_v14 }
 0x7ca   :  { %v3109_v15 = vpop.eup %3108 }
 0x7cb   :  { %1413 = vrot.lane.b32.xlu0 %v3109_v15, %s3161_s28 }
 0x83d   :  { %v1414_v16 = vpop.permute.xlu0 %1413 }
 0x83e   :  { %v1416_v17 = vmul.f32 %v3107_v6, %v1414_v16 }
 0x840   :  { %1418 = vrot.lane.b32.xlu1 %v1416_v17, %s3162_s29  ;;  %v1200_v17 = vadd.f32 %v3825_v46, %v3817_v24 }
 0x8b2   :  { %v1419_v19 = vpop.permute.xlu1 %1418 }
 0x8b3   :  { %1421 = vst.msk [vmem:[#allocation2 + $0x8] sm:$0xff] %vm87_vm0, %v1419_v19  ;;  %2804 = vmatmul.mubr.msk.f32.vlgmr.msra.gmra.mrb[72].mxu0 %vm87_vm0, %v1419_v19 }
 0x8b4   :  { %3059 = vmatpush3.bf16.msra.mxu0 %v3750_v52  ;;  %2825 = vmatprep.mubr.msk.f32.mxu0 %vm3159_vm1, %v3160_v9 }
 0x8b5   :  { %3060 = vmatprep.subr.bf16.mxu0 %v3158_v50 }
 0x8b8   :  { %3062 = vmatpush3.bf16.msra.mxu0 %v3770_v11 }
 0x8b9   :  { %3069 = vmatprep.subr.bf16.mxu0 %v3158_v50 }
 0x986   :  { %v1490_v21 = vpop.f32.mrb[72].mxu0 }
 0x987   :  { %v1494_v22 = vadd.f32 %v1490_v21, %v1185_v5  ;;  %v2805_v23 = vpop.f32.mrb[73].mxu0 }
 0x989   :  { %3110 = vtanh.f32 %v1494_v22  ;;  %v2263_v26 = vmul.f32 -1.442695, %v1494_v22 }
 0x98b   :  { %3112 = vpow2.f32 %v2263_v26 }
 0x993   :  { %v3111_v25 = vpop.eup %3110 }
 0x994   :  { %1504 = vrot.lane.b32.xlu0 %v3111_v25, %s3161_s28 }
 0x995   :  { %v3113_v27 = vpop.eup %3112 }
 0x996   :  { %v1498_v2 = vadd.f32 1.0, %v3113_v27 }
 0x998   :  { %3114 = vrcp.f32 %v1498_v2  ;;  %v2042_v2 = vld [vmem:[%s3981_s2 + $0x1d8] sm:$0xff] }
 0x9a2   :  { %v3115_v29 = vpop.eup %3114 }
 0x9a3   :  { %v1502_v32 = vmul.f32 %v3115_v29, %v1410_v14 }
 0xa06   :  { %v1505_v30 = vpop.permute.xlu0 %1504 }
 0xa07   :  { %v1507_v18 = vmul.f32 %v3115_v29, %v1505_v30 }
 0xa09   :  { %1509 = vrot.lane.b32.xlu1 %v1507_v18, %s3162_s29 }
 0xa7b   :  { %v1510_v33 = vpop.permute.xlu1 %1509 }
 0xa7c   :  { %v1512_v34 = vadd.f32 %v1510_v33, %v1502_v32 }
 0xa7e   :  { %3116 = vtanh.f32 %v1512_v34 }
 0xa88   :  { %v3117_v20 = vpop.eup %3116 }
 0xa89   :  { %1515 = vrot.lane.b32.xlu0 %v3117_v20, %s3161_s28  ;;  %v2045_v20 = vld [vmem:[%s3981_s2 + $0x1f0] sm:$0xff] }
 0xafb   :  { %v1516_v36 = vpop.permute.xlu0 %1515 }
 0xafc   :  { %v1518_v37 = vmul.f32 %v3115_v29, %v1516_v36  ;;  %v2043_v29 = vld [vmem:[%s3981_s2 + $0x1e0] sm:$0xff] }
 0xafd   :  { %v3081_v30 = vpack.c.bf16 %v2043_v29, %v2042_v2 }
 0xafe   :  { %1520 = vrot.lane.b32.xlu1 %v1518_v37, %s3162_s29 }
 0xb70   :  { %v1521_v39 = vpop.permute.xlu1 %1520 }
 0xb71   :  { %1523 = vst.msk [vmem:[#allocation2 + $0x10] sm:$0xff] %vm87_vm0, %v1521_v39  ;;  %2815 = vmatmul.mubr.msk.f32.vlgmr.msra.gmra.mrb[24].mxu1 %vm87_vm0, %v1521_v39  ;;  %v2034_v39 = vld [vmem:[#allocation2] sm:$0xff] }
 0xb72   :  { %3065 = vmatpush3.bf16.msra.mxu1 %v3750_v52  ;;  %2836 = vmatprep.mubr.msk.f32.mxu1 %vm3159_vm1, %v3160_v9 }
 0xb73   :  { %3066 = vmatprep.subr.bf16.mxu1 %v3158_v50 }
 0xb76   :  { %3068 = vmatpush3.bf16.msra.mxu1 %v3770_v11 }
 0xb77   :  { %3075 = vmatprep.subr.bf16.mxu1 %v3158_v50 }
 0xc44   :  { %v1592_v41 = vpop.f32.mrb[24].mxu1 }
 0xc45   :  { %v1596_v28 = vadd.f32 %v1592_v41, %v1190_v40  ;;  %v2816_v43 = vpop.f32.mrb[25].mxu1  ;;  %v2035_v40 = vld [vmem:[#allocation2 + $0x8] sm:$0xff]  ;;  %v2036_v41 = vld [vmem:[#allocation2 + $0x10] sm:$0xff] }
 0xc47   :  { %3118 = vtanh.f32 %v1596_v28  ;;  %v2265_v42 = vmul.f32 -1.442695, %v1596_v28 }
 0xc49   :  { %3120 = vpow2.f32 %v2265_v42  ;;  %v1205_v42 = vadd.f32 %v3817_v24, %v3831_v48 }
 0xc51   :  { %v3119_v31 = vpop.eup %3118 }
 0xc52   :  { %1606 = vrot.lane.b32.xlu0 %v3119_v31, %s3161_s28 }
 0xc53   :  { %v3121_v7 = vpop.eup %3120 }
 0xc54   :  { %v1600_v49 = vadd.f32 1.0, %v3121_v7 }
 0xc56   :  { %3122 = vrcp.f32 %v1600_v49 }
 0xc60   :  { %v3123_v51 = vpop.eup %3122 }
 0xc61   :  { %v1604_v54 = vmul.f32 %v3123_v51, %v1512_v34  ;;  %v2044_v34 = vld [vmem:[%s3981_s2 + $0x1e8] sm:$0xff] }
 0xc62   :  { %v3085_v36 = vpack.c.bf16 %v2045_v20, %v2044_v34 }
 0xcc4   :  { %v1607_v38 = vpop.permute.xlu0 %1606 }
 0xcc5   :  { %v1609_v53 = vmul.f32 %v3123_v51, %v1607_v38  ;;  %v3931_v38 = vld [vmem:[%s3981_s2 + $0x1f8] ss:$0 sm:$0xff] }
 0xcc7   :  { %1611 = vrot.lane.b32.xlu1 %v1609_v53, %s3162_s29 }
 0xd39   :  { %v1612_v55 = vpop.permute.xlu1 %1611 }
 0xd3a   :  { %v1614_v44 = vadd.f32 %v1612_v55, %v1604_v54 }
 0xd3c   :  { %3124 = vtanh.f32 %v1614_v44 }
 0xd46   :  { %v3125_v56 = vpop.eup %3124 }
 0xd47   :  { %1617 = vrot.lane.b32.xlu0 %v3125_v56, %s3161_s28 }
 0xdb9   :  { %v1618_v57 = vpop.permute.xlu0 %1617 }
 0xdba   :  { %v1620_v58 = vmul.f32 %v3123_v51, %v1618_v57 }
 0xdbc   :  { %1622 = vrot.lane.b32.xlu1 %v1620_v58, %s3162_s29 }
 0xe2e   :  { %v1623_v45 = vpop.permute.xlu1 %1622 }
 0xe2f   :  { %1625 = vst.msk [vmem:[#allocation2 + $0x18] sm:$0xff] %vm87_vm0, %v1623_v45  ;;  %2826 = vmatmul.mubr.msk.f32.vlgmr.msra.gmra.mrb[74].mxu0 %vm87_vm0, %v1623_v45 }
 0xe30   :  { %3071 = vmatpush3.bf16.msra.mxu0 %v3750_v52  ;;  %2847 = vmatprep.mubr.msk.f32.mxu0 %vm3159_vm1, %v3160_v9 }
 0xe31   :  { %3072 = vmatprep.subr.bf16.mxu0 %v3158_v50 }
 0xe34   :  { %3074 = vmatpush3.bf16.msra.mxu0 %v3770_v11 }
 0xe35   :  { %3082 = vmatprep.subr.bf16.mxu0 %v3081_v30 }
 0xe36   :  { %v2037_v28 = vld [vmem:[#allocation2 + $0x18] sm:$0xff] }
 0xf02   :  { %v1694_v61 = vpop.f32.mrb[74].mxu0 }
 0xf03   :  { %v1698_v62 = vadd.f32 %v1694_v61, %v1195_v60  ;;  %v2827_v63 = vpop.f32.mrb[75].mxu0 }
 0xf05   :  { %3126 = vtanh.f32 %v1698_v62  ;;  %v2267_v1 = vmul.f32 -1.442695, %v1698_v62 }
 0xf07   :  { %3128 = vpow2.f32 %v2267_v1 }
 0xf0f   :  { %v3127_v0 = vpop.eup %3126 }
 0xf10   :  { %1708 = vrot.lane.b32.xlu0 %v3127_v0, %s3161_s28 }
 0xf11   :  { %v3129_v3 = vpop.eup %3128 }
 0xf12   :  { %v1702_v4 = vadd.f32 1.0, %v3129_v3 }
 0xf14   :  { %3130 = vrcp.f32 %v1702_v4 }
 0xf1e   :  { %v3131_v59 = vpop.eup %3130 }
 0xf1f   :  { %v1706_v10 = vmul.f32 %v3131_v59, %v1614_v44 }
 0xf82   :  { %v1709_v6 = vpop.permute.xlu0 %1708 }
 0xf83   :  { %v1711_v8 = vmul.f32 %v3131_v59, %v1709_v6 }
 0xf85   :  { %1713 = vrot.lane.b32.xlu1 %v1711_v8, %s3162_s29 }
 0xff7   :  { %v1714_v12 = vpop.permute.xlu1 %1713 }
 0xff8   :  { %v1716_v47 = vadd.f32 %v1714_v12, %v1706_v10 }
 0xffa   :  { %3132 = vtanh.f32 %v1716_v47 }
0x1004   :  { %v3133_v13 = vpop.eup %3132 }
0x1005   :  { %1719 = vrot.lane.b32.xlu0 %v3133_v13, %s3161_s28 }
0x1077   :  { %v1720_v14 = vpop.permute.xlu0 %1719 }
0x1078   :  { %v1722_v15 = vmul.f32 %v3131_v59, %v1720_v14 }
0x107a   :  { %1724 = vrot.lane.b32.xlu1 %v1722_v15, %s3162_s29 }
0x10ec   :  { %v1725_v16 = vpop.permute.xlu1 %1724 }
0x10ed   :  { %1727 = vst.msk [vmem:[#allocation2 + $0x20] sm:$0xff] %vm87_vm0, %v1725_v16  ;;  %2837 = vmatmul.mubr.msk.f32.vlgmr.msra.gmra.mrb[26].mxu1 %vm87_vm0, %v1725_v16 }
0x10ee   :  { %3077 = vmatpush3.bf16.msra.mxu1 %v3750_v52  ;;  %2858 = vmatprep.mubr.msk.f32.mxu1 %vm3159_vm1, %v3160_v9 }
0x10ef   :  { %3078 = vmatprep.subr.bf16.mxu1 %v3158_v50 }
0x10f2   :  { %3080 = vmatpush3.bf16.msra.mxu1 %v3770_v11 }
0x10f4   :  { %v2038_v43 = vld [vmem:[#allocation2 + $0x20] sm:$0xff] }
0x11c0   :  { %v1796_v19 = vpop.f32.mrb[26].mxu1 }
0x11c1   :  { %v1800_v5 = vadd.f32 %v1796_v19, %v1200_v17  ;;  %v2838_v21 = vpop.f32.mrb[27].mxu1  ;;  %v1210_v17 = vadd.f32 %v3829_v35, %v3817_v24 }
0x11c3   :  { %3134 = vtanh.f32 %v1800_v5  ;;  %v2269_v23 = vmul.f32 -1.442695, %v1800_v5 }
0x11c5   :  { %3136 = vpow2.f32 %v2269_v23 }
0x11cd   :  { %v3135_v22 = vpop.eup %3134 }
0x11ce   :  { %1810 = vrot.lane.b32.xlu0 %v3135_v22, %s3161_s28 }
0x11cf   :  { %v3137_v52 = vpop.eup %3136 }
0x11d0   :  { %v1804_v25 = vadd.f32 1.0, %v3137_v52 }
0x11d2   :  { %3138 = vrcp.f32 %v1804_v25 }
0x11dc   :  { %v3139_v9 = vpop.eup %3138 }
0x11dd   :  { %v1808_v11 = vmul.f32 %v3139_v9, %v1716_v47 }
0x1240   :  { %v1811_v26 = vpop.permute.xlu0 %1810 }
0x1241   :  { %v1813_v50 = vmul.f32 %v3139_v9, %v1811_v26 }
0x1243   :  { %1815 = vrot.lane.b32.xlu1 %v1813_v50, %s3162_s29 }
0x12b5   :  { %v1816_v27 = vpop.permute.xlu1 %1815 }
0x12b6   :  { %v3901_v46 = vadd.f32 %v1816_v27, %v1808_v11 }
0x12b8   :  { %3140 = vtanh.f32 %v3901_v46 }
0x12c2   :  { %v3141_v18 = vpop.eup %3140 }
0x12c3   :  { %1821 = vrot.lane.b32.xlu0 %v3141_v18, %s3161_s28 }
0x1335   :  { %v1822_v32 = vpop.permute.xlu0 %1821 }
0x1336   :  { %v1824_v33 = vmul.f32 %v3139_v9, %v1822_v32 }
0x1338   :  { %1826 = vrot.lane.b32.xlu1 %v1824_v33, %s3162_s29 }
0x13aa   :  { %v1827_v37 = vpop.permute.xlu1 %1826 }
0x13ab   :  { %1829 = vst.msk [vmem:[#allocation2 + $0x28] sm:$0xff] %vm87_vm0, %v1827_v37  ;;  %2848 = vmatmul.mubr.msk.f32.vlgmr.msra.gmra.mrb[76].mxu0 %vm87_vm0, %v1827_v37 }
0x13ac   :  { %3084 = vmatpush3.bf16.msra.mxu0 %v3081_v30  ;;  %2869 = vmatprep.mubr.msk.f32.mxu0 %vm87_vm0, %v2034_v39 }
0x13ad   :  { %3086 = vmatprep.subr.bf16.mxu0 %v3085_v36 }
0x13b0   :  { %3088 = vmatpush3.bf16.msra.mxu0 %v3085_v36 }
0x13b2   :  { %v2039_v31 = vld [vmem:[#allocation2 + $0x28] sm:$0xff] }
0x13b3   :  { %2870 = vmatmul.mubr.msk.f32.vlgmr.msra.gmra.mrb[78].mxu0 %vm87_vm0, %v2035_v40 }
0x13b4   :  { %2872 = vmatprep.mubr.msk.f32.mxu0 %vm87_vm0, %v2036_v41 }
0x13b7   :  { %2873 = vmatmul.mubr.msk.f32.gmra.mrb[80].mxu0 %vm87_vm0, %v2037_v28 }
0x13b8   :  { %2875 = vmatprep.mubr.msk.f32.mxu0 %vm87_vm0, %v2038_v43 }
0x13bb   :  { %2876 = vmatmul.mubr.msk.f32.gmra.mrb[82].mxu0 %vm87_vm0, %v2039_v31 }
0x147e   :  { %v1898_v7 = vpop.f32.mrb[76].mxu0 }
0x147f   :  { %v1902_v49 = vadd.f32 %v1898_v7, %v1205_v42  ;;  %v2849_v51 = vpop.f32.mrb[77].mxu0 }
0x1481   :  { %3142 = vtanh.f32 %v1902_v49  ;;  %v2271_v0 = vmul.f32 -1.442695, %v1902_v49 }
0x1483   :  { %3144 = vpow2.f32 %v2271_v0 }
0x1486   :  { %v2871_v53 = vpop.f32.mrb[78].mxu0 }
0x1487   :  { %v2147_v54 = vadd.f32 %v2871_v53, %v3931_v38  ;;  %v2141_v55 = vpop.f32.mrb[79].mxu0 }
0x1488   :  { %v2142_v44 = vadd.f32 %v3931_v38, %v2141_v55 }
0x1489   :  { %2181 = vst [vmem:[%s3984_s3 + $0x8] sm:$0xff] %v2147_v54 }
0x148a   :  { %2180 = vst [vmem:[%s3984_s3] sm:$0xff] %v2142_v44  ;;  %v2874_v48 = vpop.f32.mrb[80].mxu0 }
0x148b   :  { %v3143_v56 = vpop.eup %3142  ;;  %v2157_v57 = vadd.f32 %v2874_v48, %v3931_v38  ;;  %v2151_v58 = vpop.f32.mrb[81].mxu0 }
0x148c   :  { %v2152_v45 = vadd.f32 %v3931_v38, %v2151_v58  ;;  %1912 = vrot.lane.b32.xlu0 %v3143_v56, %s3161_s28 }
0x148d   :  { %2183 = vst [vmem:[%s3984_s3 + $0x18] sm:$0xff] %v2157_v57  ;;  %v3145_v1 = vpop.eup %3144 }
0x148e   :  { %2182 = vst [vmem:[%s3984_s3 + $0x10] sm:$0xff] %v2152_v45  ;;  %v2877_v60 = vpop.f32.mrb[82].mxu0  ;;  %v1906_v3 = vadd.f32 1.0, %v3145_v1 }
0x148f   :  { %v2167_v61 = vadd.f32 %v2877_v60, %v3931_v38  ;;  %v2161_v62 = vpop.f32.mrb[83].mxu0 }
0x1490   :  { %v2162_v63 = vadd.f32 %v3931_v38, %v2161_v62  ;;  %3146 = vrcp.f32 %v1906_v3 }
0x1491   :  { %2185 = vst [vmem:[%s3984_s3 + $0x28] sm:$0xff] %v2167_v61 }
0x1492   :  { %2184 = vst [vmem:[%s3984_s3 + $0x20] sm:$0xff] %v2162_v63 }
0x149a   :  { %v3147_v4 = vpop.eup %3146 }
0x149b   :  { %v1910_v8 = vmul.f32 %v3147_v4, %v3901_v46 }
0x14fe   :  { %v1913_v59 = vpop.permute.xlu0 %1912 }
0x14ff   :  { %v1915_v6 = vmul.f32 %v3147_v4, %v1913_v59 }
0x1501   :  { %1917 = vrot.lane.b32.xlu1 %v1915_v6, %s3162_s29 }
0x1573   :  { %v1918_v10 = vpop.permute.xlu1 %1917 }
0x1574   :  { %v1920_v12 = vadd.f32 %v1918_v10, %v1910_v8 }
0x1576   :  { %3148 = vtanh.f32 %v1920_v12 }
0x1580   :  { %v3149_v47 = vpop.eup %3148 }
0x1581   :  { %1923 = vrot.lane.b32.xlu0 %v3149_v47, %s3161_s28 }
0x15f3   :  { %v1924_v13 = vpop.permute.xlu0 %1923 }
0x15f4   :  { %v1926_v14 = vmul.f32 %v3147_v4, %v1924_v13 }
0x15f6   :  { %1928 = vrot.lane.b32.xlu1 %v1926_v14, %s3162_s29 }
0x1668   :  { %v1929_v15 = vpop.permute.xlu1 %1928 }
0x1669   :  { %1931 = vst.msk [vmem:[#allocation2 + $0x30] sm:$0xff] %vm87_vm0, %v1929_v15  ;;  %2859 = vmatmul.mubr.msk.f32.vlgmr.msra.gmra.mrb[28].mxu1 %vm87_vm0, %v1929_v15 }
0x1670   :  { %v2040_v16 = vld [vmem:[#allocation2 + $0x30] sm:$0xff] }
0x1671   :  { %2878 = vmatprep.mubr.msk.f32.mxu0 %vm87_vm0, %v2040_v16 }
0x173c   :  { %v2000_v19 = vpop.f32.mrb[28].mxu1 }
0x173d   :  { %v2004_v5 = vadd.f32 %v2000_v19, %v1210_v17  ;;  %v2860_v21 = vpop.f32.mrb[29].mxu1 }
0x173f   :  { %3150 = vtanh.f32 %v2004_v5  ;;  %v2273_v23 = vmul.f32 -1.442695, %v2004_v5 }
0x1741   :  { %3152 = vpow2.f32 %v2273_v23 }
0x1749   :  { %v3151_v22 = vpop.eup %3150 }
0x174a   :  { %2014 = vrot.lane.b32.xlu0 %v3151_v22, %s3161_s28 }
0x174b   :  { %v3153_v52 = vpop.eup %3152 }
0x174c   :  { %v2008_v25 = vadd.f32 1.0, %v3153_v52 }
0x174e   :  { %3154 = vrcp.f32 %v2008_v25 }
0x1758   :  { %v3155_v9 = vpop.eup %3154 }
0x1759   :  { %v2012_v11 = vmul.f32 %v3155_v9, %v1920_v12 }
0x17bc   :  { %v2015_v26 = vpop.permute.xlu0 %2014 }
0x17bd   :  { %v2017_v50 = vmul.f32 %v3155_v9, %v2015_v26 }
0x17bf   :  { %2019 = vrot.lane.b32.xlu1 %v2017_v50, %s3162_s29 }
0x1831   :  { %v2020_v27 = vpop.permute.xlu1 %2019 }
0x1832   :  { %v2022_v24 = vadd.f32 %v2020_v27, %v2012_v11 }
0x1834   :  { %3156 = vtanh.f32 %v2022_v24 }
0x183e   :  { %v3157_v35 = vpop.eup %3156 }
0x183f   :  { %2025 = vrot.lane.b32.xlu0 %v3157_v35, %s3161_s28 }
0x18b1   :  { %v2026_v46 = vpop.permute.xlu0 %2025 }
0x18b2   :  { %v2028_v2 = vmul.f32 %v3155_v9, %v2026_v46 }
0x18b4   :  { %2030 = vrot.lane.b32.xlu1 %v2028_v2, %s3162_s29 }
0x1926   :  { %v2031_v29 = vpop.permute.xlu1 %2030 }
0x1927   :  { %2033 = vst.msk [vmem:[#allocation2 + $0x38] sm:$0xff] %vm87_vm0, %v2031_v29 }
0x192e   :  { %v2041_v30 = vld [vmem:[#allocation2 + $0x38] sm:$0xff] }
0x192f   :  { %2879 = vmatmul.mubr.msk.f32.gmra.mrb[84].mxu0 %vm87_vm0, %v2041_v30 }
0x1a02   :  { %v2880_v18 = vpop.f32.mrb[84].mxu0 }
0x1a03   :  { %v2177_v32 = vadd.f32 %v2880_v18, %v3931_v38  ;;  %v2171_v33 = vpop.f32.mrb[85].mxu0 }
0x1a04   :  { %v2172_v34 = vadd.f32 %v3931_v38, %v2171_v33 }
0x1a05   :  { %2187 = vst [vmem:[%s3984_s3 + $0x38] sm:$0xff] %v2177_v32 }
0x1a06   :  { %2186 = vst [vmem:[%s3984_s3 + $0x30] sm:$0xff] %v2172_v34 }

</bundles_post_ra>
